<compile_context>
chip_gen: v7x
topology: tpu7x:2x2x1
jax: 0.10.0
libtpu: 0.0.40
codegen_flags: <defaults>
</compile_context>

<pallas_src>
import functools

import numpy as np

import jax
import jax.numpy as jnp
from jax.experimental import pallas as pl
from jax.experimental.pallas import tpu as pltpu

_VMEM_LIMIT = 32 * 1024 * 1024
_MID = 8  # NCD bottleneck channels


# ----------------------------------------------------------------------------
# Pallas kernels (channel-major: rows = channels, lanes = pixels)
# ----------------------------------------------------------------------------
def _stage_kernel(x_ref, w1_ref, b1_ref, w2_ref, b2_ref, o_ref):
    """Fused feature-extractor projection + PatchRestore reduction:
       o = relu(W2 . relu(W1 . x + b1) + b2)   (two 1x1 convs)."""
    x = x_ref[...].astype(jnp.bfloat16)                         # (Cin, TL)
    h = jnp.dot(w1_ref[...], x, preferred_element_type=jnp.float32)
    h = jnp.maximum(h + b1_ref[...], 0.0)                       # (C, TL) f32
    o = jnp.dot(w2_ref[...], h.astype(jnp.bfloat16),
                preferred_element_type=jnp.float32)
    o_ref[...] = jnp.maximum(o + b2_ref[...], 0.0).astype(o_ref.dtype)


def _conv1x1_relu_kernel(x_ref, w_ref, b_ref, o_ref):
    """o = relu(W . x + b); output (mid, L) is lane-dense."""
    o = jnp.dot(w_ref[...], x_ref[...].astype(jnp.bfloat16),
                preferred_element_type=jnp.float32)
    o_ref[...] = jnp.maximum(o + b_ref[...], 0.0).astype(o_ref.dtype)


def _ncd_mid_kernel(x_ref, g_ref, u_ref, w_ref, b_ref, o_ref):
    """o = relu(W . x + b) * (g @ U) — 1x1 reduction fused with the bilinearly
    upsampled neighbour guidance (U = Kronecker bilinear matrix, on the MXU)."""
    t = jnp.dot(w_ref[...], x_ref[...].astype(jnp.bfloat16),
                preferred_element_type=jnp.float32)
    t = jnp.maximum(t + b_ref[...], 0.0)                        # (mid, L)
    gu = jnp.dot(g_ref[...].astype(jnp.bfloat16), u_ref[...],
                 preferred_element_type=jnp.float32)            # (mid, L)
    o_ref[...] = (t * gu).astype(o_ref.dtype)


def _ncd_out_kernel(x_ref, g_ref, u_ref, w_ref, b_ref, ow_ref, ob_ref, o_ref):
    """S_g head: ((relu(W.x + b) * (g @ U)) . ow) + ob; mid->1 on the VPU,
    output (1, L) lane-dense."""
    t = jnp.dot(w_ref[...], x_ref[...].astype(jnp.bfloat16),
                preferred_element_type=jnp.float32)
    t = jnp.maximum(t + b_ref[...], 0.0)
    gu = jnp.dot(g_ref[...].astype(jnp.bfloat16), u_ref[...],
                 preferred_element_type=jnp.float32)
    t = t * gu                                                  # (mid, L)
    y = jnp.sum(t * ow_ref[...], axis=0, keepdims=True)         # (1, L)
    o_ref[...] = (y + ob_ref[...]).astype(o_ref.dtype)


def _cub_kernel(x_ref, g_ref, u_ref, w_ref, b_ref, o_ref):
    """CrossUpdateBlock with the guidance bilinear resample fused in:
       g' = g @ U ;  o = ((x * (1 - sigmoid(g'))) . w) + b + g'."""
    gu = jnp.dot(g_ref[...].astype(jnp.bfloat16), u_ref[...],
                 preferred_element_type=jnp.float32)            # (1, L)
    gate = 1.0 - jax.nn.sigmoid(gu)                             # f32 EUP/VPU
    a = x_ref[...] * gate                                       # (C, L)
    y = jnp.sum(a * w_ref[...], axis=0, keepdims=True)          # C->1 on VPU
    o_ref[...] = (y + b_ref[...] + gu).astype(o_ref.dtype)      # (1, L)


# ----------------------------------------------------------------------------
# pallas_call wrappers
# ----------------------------------------------------------------------------
def _batched_call(kernel, batch, out_rows, out_cols, operands, batched_flags):
    """Grid over the batch axis ('parallel'); batched operands are (B, r, c)
    with a squeezed leading block dim, shared operands are full-block 2D."""
    in_specs = []
    for a, flag in zip(operands, batched_flags):
        if flag:
            in_specs.append(pl.BlockSpec((None,) + tuple(a.shape[1:]),
                                          lambda b: (b, 0, 0)))
        else:
            in_specs.append(pl.BlockSpec(tuple(a.shape), lambda b: (0, 0)))
    return pl.pallas_call(
        kernel,
        out_shape=jax.ShapeDtypeStruct((batch, out_rows, out_cols), jnp.float32),
        grid=(batch,),
        in_specs=in_specs,
        out_specs=pl.BlockSpec((None, out_rows, out_cols), lambda b: (b, 0, 0)),
        compiler_params=pltpu.CompilerParams(
            dimension_semantics=("parallel",),
            vmem_limit_bytes=_VMEM_LIMIT),
    )(*operands)


def stage_project(x, w1, b1, w2, b2, *, tile_l=512):
    """Fused fe-projection + RFB reduction: (B, Cin, L) -> (B, Cout//..., L)."""
    batch, cin, l = x.shape
    cout = w2.shape[0]
    # TODO(synk): at real resolutions re-derive tile_l against v7x 64 MiB VMEM
    # (input + output tiles + weights, x2 for double buffering).
    tl = l if (l <= tile_l or l % 128 != 0) else tile_l
    grid = (batch, pl.cdiv(l, tl))
    return pl.pallas_call(
        _stage_kernel,
        out_shape=jax.ShapeDtypeStruct((batch, cout, l), jnp.float32),
        grid=grid,
        in_specs=[
            pl.BlockSpec((None, cin, tl), lambda b, t: (b, 0, t)),
            pl.BlockSpec(w1.shape, lambda b, t: (0, 0)),
            pl.BlockSpec(b1.shape, lambda b, t: (0, 0)),
            pl.BlockSpec(w2.shape, lambda b, t: (0, 0)),
            pl.BlockSpec(b2.shape, lambda b, t: (0, 0)),
        ],
        out_specs=pl.BlockSpec((None, cout, tl), lambda b, t: (b, 0, t)),
        compiler_params=pltpu.CompilerParams(
            dimension_semantics=("parallel", "parallel"),
            vmem_limit_bytes=_VMEM_LIMIT),
    )(x, w1, b1, w2, b2)


def ncd_reduce(x, w, b):
    return _batched_call(_conv1x1_relu_kernel, x.shape[0], w.shape[0],
                         x.shape[2], (x, w, b), (True, False, False))


def ncd_mid(x, g, u, w, b):
    return _batched_call(_ncd_mid_kernel, x.shape[0], w.shape[0], x.shape[2],
                         (x, g, u, w, b), (True, True, False, False, False))


def ncd_out(x, g, u, w, b, ow, ob):
    return _batched_call(_ncd_out_kernel, x.shape[0], 1, x.shape[2],
                         (x, g, u, w, b, ow, ob),
                         (True, True, False, False, False, False, False))


def cub_apply(x, g, u, w, b):
    return _batched_call(_cub_kernel, x.shape[0], 1, x.shape[2],
                         (x, g, u, w, b), (True, True, False, False, False))


# ----------------------------------------------------------------------------
# Bilinear resample matrices (F.interpolate align_corners=False semantics)
# ----------------------------------------------------------------------------
def _bilinear_matrix_1d(out_size, in_size):
    m = np.zeros((out_size, in_size), np.float32)
    scale = in_size / out_size
    for j in range(out_size):
        src = (j + 0.5) * scale - 0.5
        i0 = int(np.floor(src))
        w = src - i0
        m[j, min(max(i0, 0), in_size - 1)] += 1.0 - w
        m[j, min(max(i0 + 1, 0), in_size - 1)] += w
    return m


@functools.lru_cache(maxsize=None)
def _resample_matrix(in_hw, out_hw):
    """(L_in, L_out) bilinear resample matrix = kron of per-axis 1-D matrices.
    2x-up / 0.25x-down weights are exact in bf16."""
    mh = _bilinear_matrix_1d(out_hw[0], in_hw[0])
    mw = _bilinear_matrix_1d(out_hw[1], in_hw[1])
    return jnp.asarray(np.kron(mh, mw).T, dtype=jnp.bfloat16)


# ----------------------------------------------------------------------------
# Parameters (deterministic, in-script); matmul weights stored bf16 (out, in)
# ----------------------------------------------------------------------------
def init_params(key, in_channels, mid=_MID):
    def nrm(k, shape, scale=0.1, dtype=jnp.float32):
        return (scale * jax.random.normal(k, shape, jnp.float32)).astype(dtype)

    keys = iter(jax.random.split(key, 64))
    p = {}
    for i, c in enumerate(in_channels):
        p[f"fe_w{i}"] = nrm(next(keys), (c, 3), dtype=jnp.bfloat16)       # 3 -> C
        p[f"fe_b{i}"] = jnp.zeros((c, 1), jnp.float32)
        p[f"rfb_w{i}"] = nrm(next(keys), (c // 2, c), dtype=jnp.bfloat16)  # C -> C//2
        p[f"rfb_b{i}"] = jnp.zeros((c // 2, 1), jnp.float32)
    half = [c // 2 for c in in_channels]
    for j, c in zip((2, 3, 4), half[1:]):                                  # NCD reductions
        p[f"ncd_rw{j}"] = nrm(next(keys), (mid, c), dtype=jnp.bfloat16)
        p[f"ncd_rb{j}"] = jnp.zeros((mid, 1), jnp.float32)
    p["ncd_ow"] = nrm(next(keys), (mid, 1))
    p["ncd_ob"] = jnp.zeros((1, 1), jnp.float32)
    for j, c in zip((1, 2, 3, 4), half):                                   # CrossUpdateBlocks
        p[f"cub_w{j}"] = nrm(next(keys), (c, 1))
        p[f"cub_b{j}"] = jnp.zeros((1, 1), jnp.float32)
    return p


# ----------------------------------------------------------------------------
# Model pieces
# ----------------------------------------------------------------------------
def feature_extractor(x_nchw, in_channels):
    # TODO(synk): the real backbone is passed in externally; stand-in is a
    # strided average-pool patchify (XLA glue) feeding the fused stage kernel.
    b, cin, h, w = x_nchw.shape
    feats = []
    for i, _ in enumerate(in_channels):
        stride = 2 ** (i + 1)
        s = h // stride
        pooled = x_nchw.reshape(b, cin, s, stride, s, stride).mean(axis=(3, 5))
        feats.append((pooled.reshape(b, cin, s * s), (s, s)))   # (B, Cin, L)
    return feats


def neck(params, feats):
    """Per stage: fused feature projection + PatchRestore (RFB) reduction."""
    out = []
    for i, (tokens, hw) in enumerate(feats):
        assert tokens.shape[2] == hw[0] * hw[1], "input feature has wrong size"
        y = stage_project(tokens, params[f"fe_w{i}"], params[f"fe_b{i}"],
                          params[f"rfb_w{i}"], params[f"rfb_b{i}"])
        out.append((y, hw))                                     # (B, C//2, L)
    return out


def ncd(params, x4, hw4, x3, hw3, x2, hw2):
    # TODO(synk): NeighborConnectionDecoder source not provided; PraNet-style
    # neighbour aggregation stand-in (1x1 reductions + upsample-multiply) with
    # the bilinear upsamples folded into the consuming kernels.
    r4 = ncd_reduce(x4, params["ncd_rw4"], params["ncd_rb4"])            # (B,mid,L4)
    t3 = ncd_mid(x3, r4, _resample_matrix(hw4, hw3),
                 params["ncd_rw3"], params["ncd_rb3"])                   # (B,mid,L3)
    return ncd_out(x2, t3, _resample_matrix(hw3, hw2),
                   params["ncd_rw2"], params["ncd_rb2"],
                   params["ncd_ow"], params["ncd_ob"])                   # (B,1,L2)


def decoder(params, stage_feats):
    (x1, hw1), (x2, hw2), (x3, hw3), (x4, hw4) = stage_feats
    s_g = ncd(params, x4, hw4, x3, hw3, x2, hw2)                         # (B,1,L2)

    # Guidance resample matrices (bilinear, align_corners=False); each CUB
    # kernel applies its own matrix on the MXU — no XLA resize / HBM hop on
    # the strictly-serial CUB chain.
    d_g = _resample_matrix(hw2, hw4)    # 0.25x decimation  S_g -> x4 res
    u45 = _resample_matrix(hw4, hw3)    # 2x up             cu4 -> x3 res
    u34 = _resample_matrix(hw3, hw2)    # 2x up             cu3 -> x2 res
    u23 = _resample_matrix(hw2, hw1)    # 2x up             cu2 -> x1 res

    cu4 = cub_apply(x4, jax.lax.stop_gradient(s_g), d_g,
                    params["cub_w4"], params["cub_b4"])
    cu3 = cub_apply(x3, cu4, u45, params["cub_w3"], params["cub_b3"])    # no detach (ref)
    cu2 = cub_apply(x2, jax.lax.stop_gradient(cu3), u34,
                    params["cub_w2"], params["cub_b2"])
    cu1 = cub_apply(x1, jax.lax.stop_gradient(cu2), u23,
                    params["cub_w1"], params["cub_b1"])

    def nchw(t, hw):  # (B, 1, L) -> (B, 1, H, W): free reshape, already NCHW
        return t.reshape(t.shape[0], 1, hw[0], hw[1])

    return [nchw(s_g, hw2), nchw(cu4, hw4), nchw(cu3, hw3),
            nchw(cu2, hw2), nchw(cu1, hw1)]


def detector_forward(params, x_nchw, in_channels):
    feats = feature_extractor(x_nchw, in_channels)
    stage_feats = neck(params, feats)
    return decoder(params, stage_feats)


# ----------------------------------------------------------------------------
if __name__ == "__main__":
    key = jax.random.PRNGKey(0)
    kp, kx = jax.random.split(key)

    in_channels = [8, 16, 32, 64]          # per-stage backbone channels (small)
    params = init_params(kp, in_channels)

    x = jax.random.normal(kx, (2, 3, 32, 32), jnp.float32)   # NCHW like PyTorch

    fwd = jax.jit(functools.partial(detector_forward, in_channels=tuple(in_channels)))
    outs = fwd(params, x)
    outs = jax.block_until_ready(outs)

    expected = [(2, 1, 8, 8), (2, 1, 2, 2), (2, 1, 4, 4), (2, 1, 8, 8), (2, 1, 16, 16)]
    assert [tuple(o.shape) for o in outs] == expected, [o.shape for o in outs]
    assert all(bool(jnp.all(jnp.isfinite(o))) for o in outs)
    print("KERNEL_OK")
</pallas_src>

<mosaic_0001>
module attributes {stable_mosaic.version = 11 : i64} {
  func.func @_stage_kernel(%arg0: i32, %arg1: i32, %arg2: memref<1x3x16xf32, #tpu.memory_space<vmem>>, %arg3: memref<32x3xbf16, #tpu.memory_space<vmem>>, %arg4: memref<32x1xf32, #tpu.memory_space<vmem>>, %arg5: memref<16x32xbf16, #tpu.memory_space<vmem>>, %arg6: memref<16x1xf32, #tpu.memory_space<vmem>>, %arg7: memref<1x16x16xf32, #tpu.memory_space<vmem>>) attributes {dimension_semantics = [#tpu.dimension_semantics<parallel>, #tpu.dimension_semantics<parallel>], iteration_bounds = array<i64: 2, 1>, scalar_prefetch = 0 : i64, scratch_operands = 0 : i64, tpu.core_type = #tpu.core_type<tc>, window_params = [{transform_indices = @transform_0, window_bounds = array<i64: 1, 3, 16>}, {pipeline_mode = #tpu.pipeline_mode<synchronous>, transform_indices = @transform_1, window_bounds = array<i64: 32, 3>}, {pipeline_mode = #tpu.pipeline_mode<synchronous>, transform_indices = @transform_2, window_bounds = array<i64: 32, 1>}, {pipeline_mode = #tpu.pipeline_mode<synchronous>, transform_indices = @transform_3, window_bounds = array<i64: 16, 32>}, {pipeline_mode = #tpu.pipeline_mode<synchronous>, transform_indices = @transform_4, window_bounds = array<i64: 16, 1>}, {transform_indices = @transform_5, window_bounds = array<i64: 1, 16, 16>}]} {
    %c0 = arith.constant 0 : index
    %c0_0 = arith.constant 0 : index
    %c0_1 = arith.constant 0 : index
    %0 = vector.load %arg2[%c0, %c0_0, %c0_1] : memref<1x3x16xf32, #tpu.memory_space<vmem>>, vector<1x3x16xf32>
    %1 = vector.shape_cast %0 : vector<1x3x16xf32> to vector<3x16xf32>
    %2 = arith.truncf %1 : vector<3x16xf32> to vector<3x16xbf16>
    %c0_2 = arith.constant 0 : index
    %c0_3 = arith.constant 0 : index
    %3 = vector.load %arg3[%c0_2, %c0_3] : memref<32x3xbf16, #tpu.memory_space<vmem>>, vector<32x3xbf16>
    %cst = arith.constant dense<0.000000e+00> : vector<32x16xf32>
    %4 = tpu.matmul %3, %2, %cst {dimension_numbers = #tpu.dot_dimension_numbers<[1], [0], [0], [1], [0, 0, 1, 1], [], []>} : vector<32x3xbf16>, vector<3x16xbf16>, vector<32x16xf32> -> vector<32x16xf32>
    %c0_4 = arith.constant 0 : index
    %c0_5 = arith.constant 0 : index
    %5 = vector.load %arg4[%c0_4, %c0_5] : memref<32x1xf32, #tpu.memory_space<vmem>>, vector<32x1xf32>
    %6 = vector.broadcast %5 : vector<32x1xf32> to vector<32x16xf32>
    %7 = arith.addf %4, %6 : vector<32x16xf32>
    %cst_6 = arith.constant 0.000000e+00 : f32
    %8 = vector.broadcast %cst_6 : f32 to vector<32x16xf32>
    %9 = arith.maximumf %7, %8 : vector<32x16xf32>
    %c0_7 = arith.constant 0 : index
    %c0_8 = arith.constant 0 : index
    %10 = vector.load %arg5[%c0_7, %c0_8] : memref<16x32xbf16, #tpu.memory_space<vmem>>, vector<16x32xbf16>
    %11 = arith.truncf %9 : vector<32x16xf32> to vector<32x16xbf16>
    %cst_9 = arith.constant dense<0.000000e+00> : vector<16x16xf32>
    %12 = tpu.matmul %10, %11, %cst_9 {dimension_numbers = #tpu.dot_dimension_numbers<[1], [0], [0], [1], [0, 0, 1, 1], [], []>} : vector<16x32xbf16>, vector<32x16xbf16>, vector<16x16xf32> -> vector<16x16xf32>
    %c0_10 = arith.constant 0 : index
    %c0_11 = arith.constant 0 : index
    %13 = vector.load %arg6[%c0_10, %c0_11] : memref<16x1xf32, #tpu.memory_space<vmem>>, vector<16x1xf32>
    %14 = vector.broadcast %13 : vector<16x1xf32> to vector<16x16xf32>
    %15 = arith.addf %12, %14 : vector<16x16xf32>
    %cst_12 = arith.constant 0.000000e+00 : f32
    %16 = vector.broadcast %cst_12 : f32 to vector<16x16xf32>
    %17 = arith.maximumf %15, %16 : vector<16x16xf32>
    %c0_13 = arith.constant 0 : index
    %c0_14 = arith.constant 0 : index
    %c0_15 = arith.constant 0 : index
    %18 = vector.load %arg7[%c0_13, %c0_14, %c0_15] : memref<1x16x16xf32, #tpu.memory_space<vmem>>, vector<1x16x16xf32>
    %19 = vector.shape_cast %18 : vector<1x16x16xf32> to vector<16x16xf32>
    %20 = vector.shape_cast %17 : vector<16x16xf32> to vector<1x16x16xf32>
    tpu.vector_store %arg7[%c0_13, %c0_14, %c0_15], %20 {strides = array<i32>} : memref<1x16x16xf32, #tpu.memory_space<vmem>>, vector<1x16x16xf32>,
    return
  }
  func.func @transform_0(%arg0: i32, %arg1: i32) -> (i32, i32, i32) {
    %c0_i32 = arith.constant 0 : i32
    %c0_i32_0 = arith.constant 0 : i32
    return %arg0, %c0_i32, %arg1 : i32, i32, i32
  }
  func.func @transform_1(%arg0: i32, %arg1: i32) -> (i32, i32) {
    %c0_i32 = arith.constant 0 : i32
    %c0_i32_0 = arith.constant 0 : i32
    %c0_i32_1 = arith.constant 0 : i32
    return %c0_i32, %c0_i32_0 : i32, i32
  }
  func.func @transform_2(%arg0: i32, %arg1: i32) -> (i32, i32) {
    %c0_i32 = arith.constant 0 : i32
    %c0_i32_0 = arith.constant 0 : i32
    %c0_i32_1 = arith.constant 0 : i32
    return %c0_i32, %c0_i32_0 : i32, i32
  }
  func.func @transform_3(%arg0: i32, %arg1: i32) -> (i32, i32) {
    %c0_i32 = arith.constant 0 : i32
    %c0_i32_0 = arith.constant 0 : i32
    %c0_i32_1 = arith.constant 0 : i32
    return %c0_i32, %c0_i32_0 : i32, i32
  }
  func.func @transform_4(%arg0: i32, %arg1: i32) -> (i32, i32) {
    %c0_i32 = arith.constant 0 : i32
    %c0_i32_0 = arith.constant 0 : i32
    %c0_i32_1 = arith.constant 0 : i32
    return %c0_i32, %c0_i32_0 : i32, i32
  }
  func.func @transform_5(%arg0: i32, %arg1: i32) -> (i32, i32, i32) {
    %c0_i32 = arith.constant 0 : i32
    %c0_i32_0 = arith.constant 0 : i32
    return %arg0, %c0_i32, %arg1 : i32, i32, i32
  }
}

module attributes {stable_mosaic.version = 11 : i64} {
  func.func @_stage_kernel(%arg0: i32, %arg1: i32, %arg2: memref<1x3x4xf32, #tpu.memory_space<vmem>>, %arg3: memref<64x3xbf16, #tpu.memory_space<vmem>>, %arg4: memref<64x1xf32, #tpu.memory_space<vmem>>, %arg5: memref<32x64xbf16, #tpu.memory_space<vmem>>, %arg6: memref<32x1xf32, #tpu.memory_space<vmem>>, %arg7: memref<1x32x4xf32, #tpu.memory_space<vmem>>) attributes {dimension_semantics = [#tpu.dimension_semantics<parallel>, #tpu.dimension_semantics<parallel>], iteration_bounds = array<i64: 2, 1>, scalar_prefetch = 0 : i64, scratch_operands = 0 : i64, tpu.core_type = #tpu.core_type<tc>, window_params = [{transform_indices = @transform_0, window_bounds = array<i64: 1, 3, 4>}, {pipeline_mode = #tpu.pipeline_mode<synchronous>, transform_indices = @transform_1, window_bounds = array<i64: 64, 3>}, {pipeline_mode = #tpu.pipeline_mode<synchronous>, transform_indices = @transform_2, window_bounds = array<i64: 64, 1>}, {pipeline_mode = #tpu.pipeline_mode<synchronous>, transform_indices = @transform_3, window_bounds = array<i64: 32, 64>}, {pipeline_mode = #tpu.pipeline_mode<synchronous>, transform_indices = @transform_4, window_bounds = array<i64: 32, 1>}, {transform_indices = @transform_5, window_bounds = array<i64: 1, 32, 4>}]} {
    %c0 = arith.constant 0 : index
    %c0_0 = arith.constant 0 : index
    %c0_1 = arith.constant 0 : index
    %0 = vector.load %arg2[%c0, %c0_0, %c0_1] : memref<1x3x4xf32, #tpu.memory_space<vmem>>, vector<1x3x4xf32>
    %1 = vector.shape_cast %0 : vector<1x3x4xf32> to vector<3x4xf32>
    %2 = arith.truncf %1 : vector<3x4xf32> to vector<3x4xbf16>
    %c0_2 = arith.constant 0 : index
    %c0_3 = arith.constant 0 : index
    %3 = vector.load %arg3[%c0_2, %c0_3] : memref<64x3xbf16, #tpu.memory_space<vmem>>, vector<64x3xbf16>
    %cst = arith.constant dense<0.000000e+00> : vector<64x4xf32>
    %4 = tpu.matmul %3, %2, %cst {dimension_numbers = #tpu.dot_dimension_numbers<[1], [0], [0], [1], [0, 0, 1, 1], [], []>} : vector<64x3xbf16>, vector<3x4xbf16>, vector<64x4xf32> -> vector<64x4xf32>
    %c0_4 = arith.constant 0 : index
    %c0_5 = arith.constant 0 : index
    %5 = vector.load %arg4[%c0_4, %c0_5] : memref<64x1xf32, #tpu.memory_space<vmem>>, vector<64x1xf32>
    %6 = vector.broadcast %5 : vector<64x1xf32> to vector<64x4xf32>
    %7 = arith.addf %4, %6 : vector<64x4xf32>
    %cst_6 = arith.constant 0.000000e+00 : f32
    %8 = vector.broadcast %cst_6 : f32 to vector<64x4xf32>
    %9 = arith.maximumf %7, %8 : vector<64x4xf32>
    %c0_7 = arith.constant 0 : index
    %c0_8 = arith.constant 0 : index
    %10 = vector.load %arg5[%c0_7, %c0_8] : memref<32x64xbf16, #tpu.memory_space<vmem>>, vector<32x64xbf16>
    %11 = arith.truncf %9 : vector<64x4xf32> to vector<64x4xbf16>
    %cst_9 = arith.constant dense<0.000000e+00> : vector<32x4xf32>
    %12 = tpu.matmul %10, %11, %cst_9 {dimension_numbers = #tpu.dot_dimension_numbers<[1], [0], [0], [1], [0, 0, 1, 1], [], []>} : vector<32x64xbf16>, vector<64x4xbf16>, vector<32x4xf32> -> vector<32x4xf32>
    %c0_10 = arith.constant 0 : index
    %c0_11 = arith.constant 0 : index
    %13 = vector.load %arg6[%c0_10, %c0_11] : memref<32x1xf32, #tpu.memory_space<vmem>>, vector<32x1xf32>
    %14 = vector.broadcast %13 : vector<32x1xf32> to vector<32x4xf32>
    %15 = arith.addf %12, %14 : vector<32x4xf32>
    %cst_12 = arith.constant 0.000000e+00 : f32
    %16 = vector.broadcast %cst_12 : f32 to vector<32x4xf32>
    %17 = arith.maximumf %15, %16 : vector<32x4xf32>
    %c0_13 = arith.constant 0 : index
    %c0_14 = arith.constant 0 : index
    %c0_15 = arith.constant 0 : index
    %18 = vector.load %arg7[%c0_13, %c0_14, %c0_15] : memref<1x32x4xf32, #tpu.memory_space<vmem>>, vector<1x32x4xf32>
    %19 = vector.shape_cast %18 : vector<1x32x4xf32> to vector<32x4xf32>
    %20 = vector.shape_cast %17 : vector<32x4xf32> to vector<1x32x4xf32>
    tpu.vector_store %arg7[%c0_13, %c0_14, %c0_15], %20 {strides = array<i32>} : memref<1x32x4xf32, #tpu.memory_space<vmem>>, vector<1x32x4xf32>,
    return
  }
  func.func @transform_0(%arg0: i32, %arg1: i32) -> (i32, i32, i32) {
    %c0_i32 = arith.constant 0 : i32
    %c0_i32_0 = arith.constant 0 : i32
    return %arg0, %c0_i32, %arg1 : i32, i32, i32
  }
  func.func @transform_1(%arg0: i32, %arg1: i32) -> (i32, i32) {
    %c0_i32 = arith.constant 0 : i32
    %c0_i32_0 = arith.constant 0 : i32
    %c0_i32_1 = arith.constant 0 : i32
    return %c0_i32, %c0_i32_0 : i32, i32
  }
  func.func @transform_2(%arg0: i32, %arg1: i32) -> (i32, i32) {
    %c0_i32 = arith.constant 0 : i32
    %c0_i32_0 = arith.constant 0 : i32
    %c0_i32_1 = arith.constant 0 : i32
    return %c0_i32, %c0_i32_0 : i32, i32
  }
  func.func @transform_3(%arg0: i32, %arg1: i32) -> (i32, i32) {
    %c0_i32 = arith.constant 0 : i32
    %c0_i32_0 = arith.constant 0 : i32
    %c0_i32_1 = arith.constant 0 : i32
    return %c0_i32, %c0_i32_0 : i32, i32
  }
  func.func @transform_4(%arg0: i32, %arg1: i32) -> (i32, i32) {
    %c0_i32 = arith.constant 0 : i32
    %c0_i32_0 = arith.constant 0 : i32
    %c0_i32_1 = arith.constant 0 : i32
    return %c0_i32, %c0_i32_0 : i32, i32
  }
  func.func @transform_5(%arg0: i32, %arg1: i32) -> (i32, i32, i32) {
    %c0_i32 = arith.constant 0 : i32
    %c0_i32_0 = arith.constant 0 : i32
    return %arg0, %c0_i32, %arg1 : i32, i32, i32
  }
}

module attributes {stable_mosaic.version = 11 : i64} {
  func.func @_conv1x1_relu_kernel(%arg0: i32, %arg1: memref<1x32x4xf32, #tpu.memory_space<vmem>>, %arg2: memref<8x32xbf16, #tpu.memory_space<vmem>>, %arg3: memref<8x1xf32, #tpu.memory_space<vmem>>, %arg4: memref<1x8x4xf32, #tpu.memory_space<vmem>>) attributes {dimension_semantics = [#tpu.dimension_semantics<parallel>], iteration_bounds = array<i64: 2>, scalar_prefetch = 0 : i64, scratch_operands = 0 : i64, tpu.core_type = #tpu.core_type<tc>, window_params = [{transform_indices = @transform_0, window_bounds = array<i64: 1, 32, 4>}, {pipeline_mode = #tpu.pipeline_mode<synchronous>, transform_indices = @transform_1, window_bounds = array<i64: 8, 32>}, {pipeline_mode = #tpu.pipeline_mode<synchronous>, transform_indices = @transform_2, window_bounds = array<i64: 8, 1>}, {transform_indices = @transform_3, window_bounds = array<i64: 1, 8, 4>}]} {
    %c0 = arith.constant 0 : index
    %c0_0 = arith.constant 0 : index
    %0 = vector.load %arg2[%c0, %c0_0] : memref<8x32xbf16, #tpu.memory_space<vmem>>, vector<8x32xbf16>
    %c0_1 = arith.constant 0 : index
    %c0_2 = arith.constant 0 : index
    %c0_3 = arith.constant 0 : index
    %1 = vector.load %arg1[%c0_1, %c0_2, %c0_3] : memref<1x32x4xf32, #tpu.memory_space<vmem>>, vector<1x32x4xf32>
    %2 = vector.shape_cast %1 : vector<1x32x4xf32> to vector<32x4xf32>
    %3 = arith.truncf %2 : vector<32x4xf32> to vector<32x4xbf16>
    %cst = arith.constant dense<0.000000e+00> : vector<8x4xf32>
    %4 = tpu.matmul %0, %3, %cst {dimension_numbers = #tpu.dot_dimension_numbers<[1], [0], [0], [1], [0, 0, 1, 1], [], []>} : vector<8x32xbf16>, vector<32x4xbf16>, vector<8x4xf32> -> vector<8x4xf32>
    %c0_4 = arith.constant 0 : index
    %c0_5 = arith.constant 0 : index
    %5 = vector.load %arg3[%c0_4, %c0_5] : memref<8x1xf32, #tpu.memory_space<vmem>>, vector<8x1xf32>
    %6 = vector.broadcast %5 : vector<8x1xf32> to vector<8x4xf32>
    %7 = arith.addf %4, %6 : vector<8x4xf32>
    %cst_6 = arith.constant 0.000000e+00 : f32
    %8 = vector.broadcast %cst_6 : f32 to vector<8x4xf32>
    %9 = arith.maximumf %7, %8 : vector<8x4xf32>
    %c0_7 = arith.constant 0 : index
    %c0_8 = arith.constant 0 : index
    %c0_9 = arith.constant 0 : index
    %10 = vector.load %arg4[%c0_7, %c0_8, %c0_9] : memref<1x8x4xf32, #tpu.memory_space<vmem>>, vector<1x8x4xf32>
    %11 = vector.shape_cast %10 : vector<1x8x4xf32> to vector<8x4xf32>
    %12 = vector.shape_cast %9 : vector<8x4xf32> to vector<1x8x4xf32>
    tpu.vector_store %arg4[%c0_7, %c0_8, %c0_9], %12 {strides = array<i32>} : memref<1x8x4xf32, #tpu.memory_space<vmem>>, vector<1x8x4xf32>,
    return
  }
  func.func @transform_0(%arg0: i32) -> (i32, i32, i32) {
    %c0_i32 = arith.constant 0 : i32
    %c0_i32_0 = arith.constant 0 : i32
    %c0_i32_1 = arith.constant 0 : i32
    return %arg0, %c0_i32, %c0_i32_0 : i32, i32, i32
  }
  func.func @transform_1(%arg0: i32) -> (i32, i32) {
    %c0_i32 = arith.constant 0 : i32
    %c0_i32_0 = arith.constant 0 : i32
    %c0_i32_1 = arith.constant 0 : i32
    return %c0_i32, %c0_i32_0 : i32, i32
  }
  func.func @transform_2(%arg0: i32) -> (i32, i32) {
    %c0_i32 = arith.constant 0 : i32
    %c0_i32_0 = arith.constant 0 : i32
    %c0_i32_1 = arith.constant 0 : i32
    return %c0_i32, %c0_i32_0 : i32, i32
  }
  func.func @transform_3(%arg0: i32) -> (i32, i32, i32) {
    %c0_i32 = arith.constant 0 : i32
    %c0_i32_0 = arith.constant 0 : i32
    %c0_i32_1 = arith.constant 0 : i32
    return %arg0, %c0_i32, %c0_i32_0 : i32, i32, i32
  }
}

module attributes {stable_mosaic.version = 11 : i64} {
  func.func @_ncd_mid_kernel(%arg0: i32, %arg1: memref<1x16x16xf32, #tpu.memory_space<vmem>>, %arg2: memref<1x8x4xf32, #tpu.memory_space<vmem>>, %arg3: memref<4x16xbf16, #tpu.memory_space<vmem>>, %arg4: memref<8x16xbf16, #tpu.memory_space<vmem>>, %arg5: memref<8x1xf32, #tpu.memory_space<vmem>>, %arg6: memref<1x8x16xf32, #tpu.memory_space<vmem>>) attributes {dimension_semantics = [#tpu.dimension_semantics<parallel>], iteration_bounds = array<i64: 2>, scalar_prefetch = 0 : i64, scratch_operands = 0 : i64, tpu.core_type = #tpu.core_type<tc>, window_params = [{transform_indices = @transform_0, window_bounds = array<i64: 1, 16, 16>}, {transform_indices = @transform_1, window_bounds = array<i64: 1, 8, 4>}, {pipeline_mode = #tpu.pipeline_mode<synchronous>, transform_indices = @transform_2, window_bounds = array<i64: 4, 16>}, {pipeline_mode = #tpu.pipeline_mode<synchronous>, transform_indices = @transform_3, window_bounds = array<i64: 8, 16>}, {pipeline_mode = #tpu.pipeline_mode<synchronous>, transform_indices = @transform_4, window_bounds = array<i64: 8, 1>}, {transform_indices = @transform_5, window_bounds = array<i64: 1, 8, 16>}]} {
    %c0 = arith.constant 0 : index
    %c0_0 = arith.constant 0 : index
    %0 = vector.load %arg4[%c0, %c0_0] : memref<8x16xbf16, #tpu.memory_space<vmem>>, vector<8x16xbf16>
    %c0_1 = arith.constant 0 : index
    %c0_2 = arith.constant 0 : index
    %c0_3 = arith.constant 0 : index
    %1 = vector.load %arg1[%c0_1, %c0_2, %c0_3] : memref<1x16x16xf32, #tpu.memory_space<vmem>>, vector<1x16x16xf32>
    %2 = vector.shape_cast %1 : vector<1x16x16xf32> to vector<16x16xf32>
    %3 = arith.truncf %2 : vector<16x16xf32> to vector<16x16xbf16>
    %cst = arith.constant dense<0.000000e+00> : vector<8x16xf32>
    %4 = tpu.matmul %0, %3, %cst {dimension_numbers = #tpu.dot_dimension_numbers<[1], [0], [0], [1], [0, 0, 1, 1], [], []>} : vector<8x16xbf16>, vector<16x16xbf16>, vector<8x16xf32> -> vector<8x16xf32>
    %c0_4 = arith.constant 0 : index
    %c0_5 = arith.constant 0 : index
    %5 = vector.load %arg5[%c0_4, %c0_5] : memref<8x1xf32, #tpu.memory_space<vmem>>, vector<8x1xf32>
    %6 = vector.broadcast %5 : vector<8x1xf32> to vector<8x16xf32>
    %7 = arith.addf %4, %6 : vector<8x16xf32>
    %cst_6 = arith.constant 0.000000e+00 : f32
    %8 = vector.broadcast %cst_6 : f32 to vector<8x16xf32>
    %9 = arith.maximumf %7, %8 : vector<8x16xf32>
    %c0_7 = arith.constant 0 : index
    %c0_8 = arith.constant 0 : index
    %c0_9 = arith.constant 0 : index
    %10 = vector.load %arg2[%c0_7, %c0_8, %c0_9] : memref<1x8x4xf32, #tpu.memory_space<vmem>>, vector<1x8x4xf32>
    %11 = vector.shape_cast %10 : vector<1x8x4xf32> to vector<8x4xf32>
    %12 = arith.truncf %11 : vector<8x4xf32> to vector<8x4xbf16>
    %c0_10 = arith.constant 0 : index
    %c0_11 = arith.constant 0 : index
    %13 = vector.load %arg3[%c0_10, %c0_11] : memref<4x16xbf16, #tpu.memory_space<vmem>>, vector<4x16xbf16>
    %cst_12 = arith.constant dense<0.000000e+00> : vector<8x16xf32>
    %14 = tpu.matmul %12, %13, %cst_12 {dimension_numbers = #tpu.dot_dimension_numbers<[1], [0], [0], [1], [0, 0, 1, 1], [], []>} : vector<8x4xbf16>, vector<4x16xbf16>, vector<8x16xf32> -> vector<8x16xf32>
    %15 = arith.mulf %9, %14 : vector<8x16xf32>
    %c0_13 = arith.constant 0 : index
    %c0_14 = arith.constant 0 : index
    %c0_15 = arith.constant 0 : index
    %16 = vector.load %arg6[%c0_13, %c0_14, %c0_15] : memref<1x8x16xf32, #tpu.memory_space<vmem>>, vector<1x8x16xf32>
    %17 = vector.shape_cast %16 : vector<1x8x16xf32> to vector<8x16xf32>
    %18 = vector.shape_cast %15 : vector<8x16xf32> to vector<1x8x16xf32>
    tpu.vector_store %arg6[%c0_13, %c0_14, %c0_15], %18 {strides = array<i32>} : memref<1x8x16xf32, #tpu.memory_space<vmem>>, vector<1x8x16xf32>,
    return
  }
  func.func @transform_0(%arg0: i32) -> (i32, i32, i32) {
    %c0_i32 = arith.constant 0 : i32
    %c0_i32_0 = arith.constant 0 : i32
    %c0_i32_1 = arith.constant 0 : i32
    return %arg0, %c0_i32, %c0_i32_0 : i32, i32, i32
  }
  func.func @transform_1(%arg0: i32) -> (i32, i32, i32) {
    %c0_i32 = arith.constant 0 : i32
    %c0_i32_0 = arith.constant 0 : i32
    %c0_i32_1 = arith.constant 0 : i32
    return %arg0, %c0_i32, %c0_i32_0 : i32, i32, i32
  }
  func.func @transform_2(%arg0: i32) -> (i32, i32) {
    %c0_i32 = arith.constant 0 : i32
    %c0_i32_0 = arith.constant 0 : i32
    %c0_i32_1 = arith.constant 0 : i32
    return %c0_i32, %c0_i32_0 : i32, i32
  }
  func.func @transform_3(%arg0: i32) -> (i32, i32) {
    %c0_i32 = arith.constant 0 : i32
    %c0_i32_0 = arith.constant 0 : i32
    %c0_i32_1 = arith.constant 0 : i32
    return %c0_i32, %c0_i32_0 : i32, i32
  }
  func.func @transform_4(%arg0: i32) -> (i32, i32) {
    %c0_i32 = arith.constant 0 : i32
    %c0_i32_0 = arith.constant 0 : i32
    %c0_i32_1 = arith.constant 0 : i32
    return %c0_i32, %c0_i32_0 : i32, i32
  }
  func.func @transform_5(%arg0: i32) -> (i32, i32, i32) {
    %c0_i32 = arith.constant 0 : i32
    %c0_i32_0 = arith.constant 0 : i32
    %c0_i32_1 = arith.constant 0 : i32
    return %arg0, %c0_i32, %c0_i32_0 : i32, i32, i32
  }
}

module attributes {stable_mosaic.version = 11 : i64} {
  func.func @_stage_kernel(%arg0: i32, %arg1: i32, %arg2: memref<1x3x64xf32, #tpu.memory_space<vmem>>, %arg3: memref<16x3xbf16, #tpu.memory_space<vmem>>, %arg4: memref<16x1xf32, #tpu.memory_space<vmem>>, %arg5: memref<8x16xbf16, #tpu.memory_space<vmem>>, %arg6: memref<8x1xf32, #tpu.memory_space<vmem>>, %arg7: memref<1x8x64xf32, #tpu.memory_space<vmem>>) attributes {dimension_semantics = [#tpu.dimension_semantics<parallel>, #tpu.dimension_semantics<parallel>], iteration_bounds = array<i64: 2, 1>, scalar_prefetch = 0 : i64, scratch_operands = 0 : i64, tpu.core_type = #tpu.core_type<tc>, window_params = [{transform_indices = @transform_0, window_bounds = array<i64: 1, 3, 64>}, {pipeline_mode = #tpu.pipeline_mode<synchronous>, transform_indices = @transform_1, window_bounds = array<i64: 16, 3>}, {pipeline_mode = #tpu.pipeline_mode<synchronous>, transform_indices = @transform_2, window_bounds = array<i64: 16, 1>}, {pipeline_mode = #tpu.pipeline_mode<synchronous>, transform_indices = @transform_3, window_bounds = array<i64: 8, 16>}, {pipeline_mode = #tpu.pipeline_mode<synchronous>, transform_indices = @transform_4, window_bounds = array<i64: 8, 1>}, {transform_indices = @transform_5, window_bounds = array<i64: 1, 8, 64>}]} {
    %c0 = arith.constant 0 : index
    %c0_0 = arith.constant 0 : index
    %c0_1 = arith.constant 0 : index
    %0 = vector.load %arg2[%c0, %c0_0, %c0_1] : memref<1x3x64xf32, #tpu.memory_space<vmem>>, vector<1x3x64xf32>
    %1 = vector.shape_cast %0 : vector<1x3x64xf32> to vector<3x64xf32>
    %2 = arith.truncf %1 : vector<3x64xf32> to vector<3x64xbf16>
    %c0_2 = arith.constant 0 : index
    %c0_3 = arith.constant 0 : index
    %3 = vector.load %arg3[%c0_2, %c0_3] : memref<16x3xbf16, #tpu.memory_space<vmem>>, vector<16x3xbf16>
    %cst = arith.constant dense<0.000000e+00> : vector<16x64xf32>
    %4 = tpu.matmul %3, %2, %cst {dimension_numbers = #tpu.dot_dimension_numbers<[1], [0], [0], [1], [0, 0, 1, 1], [], []>} : vector<16x3xbf16>, vector<3x64xbf16>, vector<16x64xf32> -> vector<16x64xf32>
    %c0_4 = arith.constant 0 : index
    %c0_5 = arith.constant 0 : index
    %5 = vector.load %arg4[%c0_4, %c0_5] : memref<16x1xf32, #tpu.memory_space<vmem>>, vector<16x1xf32>
    %6 = vector.broadcast %5 : vector<16x1xf32> to vector<16x64xf32>
    %7 = arith.addf %4, %6 : vector<16x64xf32>
    %cst_6 = arith.constant 0.000000e+00 : f32
    %8 = vector.broadcast %cst_6 : f32 to vector<16x64xf32>
    %9 = arith.maximumf %7, %8 : vector<16x64xf32>
    %c0_7 = arith.constant 0 : index
    %c0_8 = arith.constant 0 : index
    %10 = vector.load %arg5[%c0_7, %c0_8] : memref<8x16xbf16, #tpu.memory_space<vmem>>, vector<8x16xbf16>
    %11 = arith.truncf %9 : vector<16x64xf32> to vector<16x64xbf16>
    %cst_9 = arith.constant dense<0.000000e+00> : vector<8x64xf32>
    %12 = tpu.matmul %10, %11, %cst_9 {dimension_numbers = #tpu.dot_dimension_numbers<[1], [0], [0], [1], [0, 0, 1, 1], [], []>} : vector<8x16xbf16>, vector<16x64xbf16>, vector<8x64xf32> -> vector<8x64xf32>
    %c0_10 = arith.constant 0 : index
    %c0_11 = arith.constant 0 : index
    %13 = vector.load %arg6[%c0_10, %c0_11] : memref<8x1xf32, #tpu.memory_space<vmem>>, vector<8x1xf32>
    %14 = vector.broadcast %13 : vector<8x1xf32> to vector<8x64xf32>
    %15 = arith.addf %12, %14 : vector<8x64xf32>
    %cst_12 = arith.constant 0.000000e+00 : f32
    %16 = vector.broadcast %cst_12 : f32 to vector<8x64xf32>
    %17 = arith.maximumf %15, %16 : vector<8x64xf32>
    %c0_13 = arith.constant 0 : index
    %c0_14 = arith.constant 0 : index
    %c0_15 = arith.constant 0 : index
    %18 = vector.load %arg7[%c0_13, %c0_14, %c0_15] : memref<1x8x64xf32, #tpu.memory_space<vmem>>, vector<1x8x64xf32>
    %19 = vector.shape_cast %18 : vector<1x8x64xf32> to vector<8x64xf32>
    %20 = vector.shape_cast %17 : vector<8x64xf32> to vector<1x8x64xf32>
    tpu.vector_store %arg7[%c0_13, %c0_14, %c0_15], %20 {strides = array<i32>} : memref<1x8x64xf32, #tpu.memory_space<vmem>>, vector<1x8x64xf32>,
    return
  }
  func.func @transform_0(%arg0: i32, %arg1: i32) -> (i32, i32, i32) {
    %c0_i32 = arith.constant 0 : i32
    %c0_i32_0 = arith.constant 0 : i32
    return %arg0, %c0_i32, %arg1 : i32, i32, i32
  }
  func.func @transform_1(%arg0: i32, %arg1: i32) -> (i32, i32) {
    %c0_i32 = arith.constant 0 : i32
    %c0_i32_0 = arith.constant 0 : i32
    %c0_i32_1 = arith.constant 0 : i32
    return %c0_i32, %c0_i32_0 : i32, i32
  }
  func.func @transform_2(%arg0: i32, %arg1: i32) -> (i32, i32) {
    %c0_i32 = arith.constant 0 : i32
    %c0_i32_0 = arith.constant 0 : i32
    %c0_i32_1 = arith.constant 0 : i32
    return %c0_i32, %c0_i32_0 : i32, i32
  }
  func.func @transform_3(%arg0: i32, %arg1: i32) -> (i32, i32) {
    %c0_i32 = arith.constant 0 : i32
    %c0_i32_0 = arith.constant 0 : i32
    %c0_i32_1 = arith.constant 0 : i32
    return %c0_i32, %c0_i32_0 : i32, i32
  }
  func.func @transform_4(%arg0: i32, %arg1: i32) -> (i32, i32) {
    %c0_i32 = arith.constant 0 : i32
    %c0_i32_0 = arith.constant 0 : i32
    %c0_i32_1 = arith.constant 0 : i32
    return %c0_i32, %c0_i32_0 : i32, i32
  }
  func.func @transform_5(%arg0: i32, %arg1: i32) -> (i32, i32, i32) {
    %c0_i32 = arith.constant 0 : i32
    %c0_i32_0 = arith.constant 0 : i32
    return %arg0, %c0_i32, %arg1 : i32, i32, i32
  }
}

module attributes {stable_mosaic.version = 11 : i64} {
  func.func @_ncd_out_kernel(%arg0: i32, %arg1: memref<1x8x64xf32, #tpu.memory_space<vmem>>, %arg2: memref<1x8x16xf32, #tpu.memory_space<vmem>>, %arg3: memref<16x64xbf16, #tpu.memory_space<vmem>>, %arg4: memref<8x8xbf16, #tpu.memory_space<vmem>>, %arg5: memref<8x1xf32, #tpu.memory_space<vmem>>, %arg6: memref<8x1xf32, #tpu.memory_space<vmem>>, %arg7: memref<1x1xf32, #tpu.memory_space<vmem>>, %arg8: memref<1x1x64xf32, #tpu.memory_space<vmem>>) attributes {dimension_semantics = [#tpu.dimension_semantics<parallel>], iteration_bounds = array<i64: 2>, scalar_prefetch = 0 : i64, scratch_operands = 0 : i64, tpu.core_type = #tpu.core_type<tc>, window_params = [{transform_indices = @transform_0, window_bounds = array<i64: 1, 8, 64>}, {transform_indices = @transform_1, window_bounds = array<i64: 1, 8, 16>}, {pipeline_mode = #tpu.pipeline_mode<synchronous>, transform_indices = @transform_2, window_bounds = array<i64: 16, 64>}, {pipeline_mode = #tpu.pipeline_mode<synchronous>, transform_indices = @transform_3, window_bounds = array<i64: 8, 8>}, {pipeline_mode = #tpu.pipeline_mode<synchronous>, transform_indices = @transform_4, window_bounds = array<i64: 8, 1>}, {pipeline_mode = #tpu.pipeline_mode<synchronous>, transform_indices = @transform_5, window_bounds = array<i64: 8, 1>}, {pipeline_mode = #tpu.pipeline_mode<synchronous>, transform_indices = @transform_6, window_bounds = array<i64: 1, 1>}, {transform_indices = @transform_7, window_bounds = array<i64: 1, 1, 64>}]} {
    %c0 = arith.constant 0 : index
    %c0_0 = arith.constant 0 : index
    %0 = vector.load %arg4[%c0, %c0_0] : memref<8x8xbf16, #tpu.memory_space<vmem>>, vector<8x8xbf16>
    %c0_1 = arith.constant 0 : index
    %c0_2 = arith.constant 0 : index
    %c0_3 = arith.constant 0 : index
    %1 = vector.load %arg1[%c0_1, %c0_2, %c0_3] : memref<1x8x64xf32, #tpu.memory_space<vmem>>, vector<1x8x64xf32>
    %2 = vector.shape_cast %1 : vector<1x8x64xf32> to vector<8x64xf32>
    %3 = arith.truncf %2 : vector<8x64xf32> to vector<8x64xbf16>
    %cst = arith.constant dense<0.000000e+00> : vector<8x64xf32>
    %4 = tpu.matmul %0, %3, %cst {dimension_numbers = #tpu.dot_dimension_numbers<[1], [0], [0], [1], [0, 0, 1, 1], [], []>} : vector<8x8xbf16>, vector<8x64xbf16>, vector<8x64xf32> -> vector<8x64xf32>
    %c0_4 = arith.constant 0 : index
    %c0_5 = arith.constant 0 : index
    %5 = vector.load %arg5[%c0_4, %c0_5] : memref<8x1xf32, #tpu.memory_space<vmem>>, vector<8x1xf32>
    %6 = vector.broadcast %5 : vector<8x1xf32> to vector<8x64xf32>
    %7 = arith.addf %4, %6 : vector<8x64xf32>
    %cst_6 = arith.constant 0.000000e+00 : f32
    %8 = vector.broadcast %cst_6 : f32 to vector<8x64xf32>
    %9 = arith.maximumf %7, %8 : vector<8x64xf32>
    %c0_7 = arith.constant 0 : index
    %c0_8 = arith.constant 0 : index
    %c0_9 = arith.constant 0 : index
    %10 = vector.load %arg2[%c0_7, %c0_8, %c0_9] : memref<1x8x16xf32, #tpu.memory_space<vmem>>, vector<1x8x16xf32>
    %11 = vector.shape_cast %10 : vector<1x8x16xf32> to vector<8x16xf32>
    %12 = arith.truncf %11 : vector<8x16xf32> to vector<8x16xbf16>
    %c0_10 = arith.constant 0 : index
    %c0_11 = arith.constant 0 : index
    %13 = vector.load %arg3[%c0_10, %c0_11] : memref<16x64xbf16, #tpu.memory_space<vmem>>, vector<16x64xbf16>
    %cst_12 = arith.constant dense<0.000000e+00> : vector<8x64xf32>
    %14 = tpu.matmul %12, %13, %cst_12 {dimension_numbers = #tpu.dot_dimension_numbers<[1], [0], [0], [1], [0, 0, 1, 1], [], []>} : vector<8x16xbf16>, vector<16x64xbf16>, vector<8x64xf32> -> vector<8x64xf32>
    %15 = arith.mulf %9, %14 : vector<8x64xf32>
    %c0_13 = arith.constant 0 : index
    %c0_14 = arith.constant 0 : index
    %16 = vector.load %arg6[%c0_13, %c0_14] : memref<8x1xf32, #tpu.memory_space<vmem>>, vector<8x1xf32>
    %17 = vector.broadcast %16 : vector<8x1xf32> to vector<8x64xf32>
    %18 = arith.mulf %15, %17 : vector<8x64xf32>
    %cst_15 = arith.constant dense<0.000000e+00> : vector<64xf32>
    %19 = vector.multi_reduction <add>, %18, %cst_15 [0] : vector<8x64xf32> to vector<64xf32>
    %20 = vector.shape_cast %19 : vector<64xf32> to vector<1x64xf32>
    %c0_16 = arith.constant 0 : index
    %c0_17 = arith.constant 0 : index
    %21 = vector.load %arg7[%c0_16, %c0_17] : memref<1x1xf32, #tpu.memory_space<vmem>>, vector<1x1xf32>
    %22 = vector.broadcast %21 : vector<1x1xf32> to vector<1x64xf32>
    %23 = arith.addf %20, %22 : vector<1x64xf32>
    %c0_18 = arith.constant 0 : index
    %c0_19 = arith.constant 0 : index
    %c0_20 = arith.constant 0 : index
    %24 = vector.load %arg8[%c0_18, %c0_19, %c0_20] : memref<1x1x64xf32, #tpu.memory_space<vmem>>, vector<1x1x64xf32>
    %25 = vector.shape_cast %24 : vector<1x1x64xf32> to vector<1x64xf32>
    %26 = vector.shape_cast %23 : vector<1x64xf32> to vector<1x1x64xf32>
    tpu.vector_store %arg8[%c0_18, %c0_19, %c0_20], %26 {strides = array<i32>} : memref<1x1x64xf32, #tpu.memory_space<vmem>>, vector<1x1x64xf32>,
    return
  }
  func.func @transform_0(%arg0: i32) -> (i32, i32, i32) {
    %c0_i32 = arith.constant 0 : i32
    %c0_i32_0 = arith.constant 0 : i32
    %c0_i32_1 = arith.constant 0 : i32
    return %arg0, %c0_i32, %c0_i32_0 : i32, i32, i32
  }
  func.func @transform_1(%arg0: i32) -> (i32, i32, i32) {
    %c0_i32 = arith.constant 0 : i32
    %c0_i32_0 = arith.constant 0 : i32
    %c0_i32_1 = arith.constant 0 : i32
    return %arg0, %c0_i32, %c0_i32_0 : i32, i32, i32
  }
  func.func @transform_2(%arg0: i32) -> (i32, i32) {
    %c0_i32 = arith.constant 0 : i32
    %c0_i32_0 = arith.constant 0 : i32
    %c0_i32_1 = arith.constant 0 : i32
    return %c0_i32, %c0_i32_0 : i32, i32
  }
  func.func @transform_3(%arg0: i32) -> (i32, i32) {
    %c0_i32 = arith.constant 0 : i32
    %c0_i32_0 = arith.constant 0 : i32
    %c0_i32_1 = arith.constant 0 : i32
    return %c0_i32, %c0_i32_0 : i32, i32
  }
  func.func @transform_4(%arg0: i32) -> (i32, i32) {
    %c0_i32 = arith.constant 0 : i32
    %c0_i32_0 = arith.constant 0 : i32
    %c0_i32_1 = arith.constant 0 : i32
    return %c0_i32, %c0_i32_0 : i32, i32
  }
  func.func @transform_5(%arg0: i32) -> (i32, i32) {
    %c0_i32 = arith.constant 0 : i32
    %c0_i32_0 = arith.constant 0 : i32
    %c0_i32_1 = arith.constant 0 : i32
    return %c0_i32, %c0_i32_0 : i32, i32
  }
  func.func @transform_6(%arg0: i32) -> (i32, i32) {
    %c0_i32 = arith.constant 0 : i32
    %c0_i32_0 = arith.constant 0 : i32
    %c0_i32_1 = arith.constant 0 : i32
    return %c0_i32, %c0_i32_0 : i32, i32
  }
  func.func @transform_7(%arg0: i32) -> (i32, i32, i32) {
    %c0_i32 = arith.constant 0 : i32
    %c0_i32_0 = arith.constant 0 : i32
    %c0_i32_1 = arith.constant 0 : i32
    return %arg0, %c0_i32, %c0_i32_0 : i32, i32, i32
  }
}

module attributes {stable_mosaic.version = 11 : i64} {
  func.func @_cub_kernel(%arg0: i32, %arg1: memref<1x32x4xf32, #tpu.memory_space<vmem>>, %arg2: memref<1x1x64xf32, #tpu.memory_space<vmem>>, %arg3: memref<64x4xbf16, #tpu.memory_space<vmem>>, %arg4: memref<32x1xf32, #tpu.memory_space<vmem>>, %arg5: memref<1x1xf32, #tpu.memory_space<vmem>>, %arg6: memref<1x1x4xf32, #tpu.memory_space<vmem>>) attributes {dimension_semantics = [#tpu.dimension_semantics<parallel>], iteration_bounds = array<i64: 2>, scalar_prefetch = 0 : i64, scratch_operands = 0 : i64, tpu.core_type = #tpu.core_type<tc>, window_params = [{transform_indices = @transform_0, window_bounds = array<i64: 1, 32, 4>}, {transform_indices = @transform_1, window_bounds = array<i64: 1, 1, 64>}, {pipeline_mode = #tpu.pipeline_mode<synchronous>, transform_indices = @transform_2, window_bounds = array<i64: 64, 4>}, {pipeline_mode = #tpu.pipeline_mode<synchronous>, transform_indices = @transform_3, window_bounds = array<i64: 32, 1>}, {pipeline_mode = #tpu.pipeline_mode<synchronous>, transform_indices = @transform_4, window_bounds = array<i64: 1, 1>}, {transform_indices = @transform_5, window_bounds = array<i64: 1, 1, 4>}]} {
    %c0 = arith.constant 0 : index
    %c0_0 = arith.constant 0 : index
    %c0_1 = arith.constant 0 : index
    %0 = vector.load %arg2[%c0, %c0_0, %c0_1] : memref<1x1x64xf32, #tpu.memory_space<vmem>>, vector<1x1x64xf32>
    %1 = vector.shape_cast %0 : vector<1x1x64xf32> to vector<1x64xf32>
    %2 = arith.truncf %1 : vector<1x64xf32> to vector<1x64xbf16>
    %c0_2 = arith.constant 0 : index
    %c0_3 = arith.constant 0 : index
    %3 = vector.load %arg3[%c0_2, %c0_3] : memref<64x4xbf16, #tpu.memory_space<vmem>>, vector<64x4xbf16>
    %cst = arith.constant dense<0.000000e+00> : vector<1x4xf32>
    %4 = tpu.matmul %2, %3, %cst {dimension_numbers = #tpu.dot_dimension_numbers<[1], [0], [0], [1], [0, 0, 1, 1], [], []>} : vector<1x64xbf16>, vector<64x4xbf16>, vector<1x4xf32> -> vector<1x4xf32>
    %5 = arith.negf %4 : vector<1x4xf32>
    %6 = math.exp %5 : vector<1x4xf32>
    %cst_4 = arith.constant 1.000000e+00 : f32
    %7 = vector.broadcast %cst_4 : f32 to vector<1x4xf32>
    %8 = arith.addf %7, %6 : vector<1x4xf32>
    %9 = arith.divf %7, %8 : vector<1x4xf32>
    %cst_5 = arith.constant 1.000000e+00 : f32
    %10 = vector.broadcast %cst_5 : f32 to vector<1x4xf32>
    %11 = arith.subf %10, %9 : vector<1x4xf32>
    %c0_6 = arith.constant 0 : index
    %c0_7 = arith.constant 0 : index
    %c0_8 = arith.constant 0 : index
    %12 = vector.load %arg1[%c0_6, %c0_7, %c0_8] : memref<1x32x4xf32, #tpu.memory_space<vmem>>, vector<1x32x4xf32>
    %13 = vector.shape_cast %12 : vector<1x32x4xf32> to vector<32x4xf32>
    %14 = vector.broadcast %11 : vector<1x4xf32> to vector<32x4xf32>
    %15 = arith.mulf %13, %14 : vector<32x4xf32>
    %c0_9 = arith.constant 0 : index
    %c0_10 = arith.constant 0 : index
    %16 = vector.load %arg4[%c0_9, %c0_10] : memref<32x1xf32, #tpu.memory_space<vmem>>, vector<32x1xf32>
    %17 = vector.broadcast %16 : vector<32x1xf32> to vector<32x4xf32>
    %18 = arith.mulf %15, %17 : vector<32x4xf32>
    %cst_11 = arith.constant dense<0.000000e+00> : vector<4xf32>
    %19 = vector.multi_reduction <add>, %18, %cst_11 [0] : vector<32x4xf32> to vector<4xf32>
    %20 = vector.shape_cast %19 : vector<4xf32> to vector<1x4xf32>
    %c0_12 = arith.constant 0 : index
    %c0_13 = arith.constant 0 : index
    %21 = vector.load %arg5[%c0_12, %c0_13] : memref<1x1xf32, #tpu.memory_space<vmem>>, vector<1x1xf32>
    %22 = vector.broadcast %21 : vector<1x1xf32> to vector<1x4xf32>
    %23 = arith.addf %20, %22 : vector<1x4xf32>
    %24 = arith.addf %23, %4 : vector<1x4xf32>
    %c0_14 = arith.constant 0 : index
    %c0_15 = arith.constant 0 : index
    %c0_16 = arith.constant 0 : index
    %25 = vector.load %arg6[%c0_14, %c0_15, %c0_16] : memref<1x1x4xf32, #tpu.memory_space<vmem>>, vector<1x1x4xf32>
    %26 = vector.shape_cast %25 : vector<1x1x4xf32> to vector<1x4xf32>
    %27 = vector.shape_cast %24 : vector<1x4xf32> to vector<1x1x4xf32>
    tpu.vector_store %arg6[%c0_14, %c0_15, %c0_16], %27 {strides = array<i32>} : memref<1x1x4xf32, #tpu.memory_space<vmem>>, vector<1x1x4xf32>,
    return
  }
  func.func @transform_0(%arg0: i32) -> (i32, i32, i32) {
    %c0_i32 = arith.constant 0 : i32
    %c0_i32_0 = arith.constant 0 : i32
    %c0_i32_1 = arith.constant 0 : i32
    return %arg0, %c0_i32, %c0_i32_0 : i32, i32, i32
  }
  func.func @transform_1(%arg0: i32) -> (i32, i32, i32) {
    %c0_i32 = arith.constant 0 : i32
    %c0_i32_0 = arith.constant 0 : i32
    %c0_i32_1 = arith.constant 0 : i32
    return %arg0, %c0_i32, %c0_i32_0 : i32, i32, i32
  }
  func.func @transform_2(%arg0: i32) -> (i32, i32) {
    %c0_i32 = arith.constant 0 : i32
    %c0_i32_0 = arith.constant 0 : i32
    %c0_i32_1 = arith.constant 0 : i32
    return %c0_i32, %c0_i32_0 : i32, i32
  }
  func.func @transform_3(%arg0: i32) -> (i32, i32) {
    %c0_i32 = arith.constant 0 : i32
    %c0_i32_0 = arith.constant 0 : i32
    %c0_i32_1 = arith.constant 0 : i32
    return %c0_i32, %c0_i32_0 : i32, i32
  }
  func.func @transform_4(%arg0: i32) -> (i32, i32) {
    %c0_i32 = arith.constant 0 : i32
    %c0_i32_0 = arith.constant 0 : i32
    %c0_i32_1 = arith.constant 0 : i32
    return %c0_i32, %c0_i32_0 : i32, i32
  }
  func.func @transform_5(%arg0: i32) -> (i32, i32, i32) {
    %c0_i32 = arith.constant 0 : i32
    %c0_i32_0 = arith.constant 0 : i32
    %c0_i32_1 = arith.constant 0 : i32
    return %arg0, %c0_i32, %c0_i32_0 : i32, i32, i32
  }
}

module attributes {stable_mosaic.version = 11 : i64} {
  func.func @_cub_kernel(%arg0: i32, %arg1: memref<1x16x16xf32, #tpu.memory_space<vmem>>, %arg2: memref<1x1x4xf32, #tpu.memory_space<vmem>>, %arg3: memref<4x16xbf16, #tpu.memory_space<vmem>>, %arg4: memref<16x1xf32, #tpu.memory_space<vmem>>, %arg5: memref<1x1xf32, #tpu.memory_space<vmem>>, %arg6: memref<1x1x16xf32, #tpu.memory_space<vmem>>) attributes {dimension_semantics = [#tpu.dimension_semantics<parallel>], iteration_bounds = array<i64: 2>, scalar_prefetch = 0 : i64, scratch_operands = 0 : i64, tpu.core_type = #tpu.core_type<tc>, window_params = [{transform_indices = @transform_0, window_bounds = array<i64: 1, 16, 16>}, {transform_indices = @transform_1, window_bounds = array<i64: 1, 1, 4>}, {pipeline_mode = #tpu.pipeline_mode<synchronous>, transform_indices = @transform_2, window_bounds = array<i64: 4, 16>}, {pipeline_mode = #tpu.pipeline_mode<synchronous>, transform_indices = @transform_3, window_bounds = array<i64: 16, 1>}, {pipeline_mode = #tpu.pipeline_mode<synchronous>, transform_indices = @transform_4, window_bounds = array<i64: 1, 1>}, {transform_indices = @transform_5, window_bounds = array<i64: 1, 1, 16>}]} {
    %c0 = arith.constant 0 : index
    %c0_0 = arith.constant 0 : index
    %c0_1 = arith.constant 0 : index
    %0 = vector.load %arg2[%c0, %c0_0, %c0_1] : memref<1x1x4xf32, #tpu.memory_space<vmem>>, vector<1x1x4xf32>
    %1 = vector.shape_cast %0 : vector<1x1x4xf32> to vector<1x4xf32>
    %2 = arith.truncf %1 : vector<1x4xf32> to vector<1x4xbf16>
    %c0_2 = arith.constant 0 : index
    %c0_3 = arith.constant 0 : index
    %3 = vector.load %arg3[%c0_2, %c0_3] : memref<4x16xbf16, #tpu.memory_space<vmem>>, vector<4x16xbf16>
    %cst = arith.constant dense<0.000000e+00> : vector<1x16xf32>
    %4 = tpu.matmul %2, %3, %cst {dimension_numbers = #tpu.dot_dimension_numbers<[1], [0], [0], [1], [0, 0, 1, 1], [], []>} : vector<1x4xbf16>, vector<4x16xbf16>, vector<1x16xf32> -> vector<1x16xf32>
    %5 = arith.negf %4 : vector<1x16xf32>
    %6 = math.exp %5 : vector<1x16xf32>
    %cst_4 = arith.constant 1.000000e+00 : f32
    %7 = vector.broadcast %cst_4 : f32 to vector<1x16xf32>
    %8 = arith.addf %7, %6 : vector<1x16xf32>
    %9 = arith.divf %7, %8 : vector<1x16xf32>
    %cst_5 = arith.constant 1.000000e+00 : f32
    %10 = vector.broadcast %cst_5 : f32 to vector<1x16xf32>
    %11 = arith.subf %10, %9 : vector<1x16xf32>
    %c0_6 = arith.constant 0 : index
    %c0_7 = arith.constant 0 : index
    %c0_8 = arith.constant 0 : index
    %12 = vector.load %arg1[%c0_6, %c0_7, %c0_8] : memref<1x16x16xf32, #tpu.memory_space<vmem>>, vector<1x16x16xf32>
    %13 = vector.shape_cast %12 : vector<1x16x16xf32> to vector<16x16xf32>
    %14 = vector.broadcast %11 : vector<1x16xf32> to vector<16x16xf32>
    %15 = arith.mulf %13, %14 : vector<16x16xf32>
    %c0_9 = arith.constant 0 : index
    %c0_10 = arith.constant 0 : index
    %16 = vector.load %arg4[%c0_9, %c0_10] : memref<16x1xf32, #tpu.memory_space<vmem>>, vector<16x1xf32>
    %17 = vector.broadcast %16 : vector<16x1xf32> to vector<16x16xf32>
    %18 = arith.mulf %15, %17 : vector<16x16xf32>
    %cst_11 = arith.constant dense<0.000000e+00> : vector<16xf32>
    %19 = vector.multi_reduction <add>, %18, %cst_11 [0] : vector<16x16xf32> to vector<16xf32>
    %20 = vector.shape_cast %19 : vector<16xf32> to vector<1x16xf32>
    %c0_12 = arith.constant 0 : index
    %c0_13 = arith.constant 0 : index
    %21 = vector.load %arg5[%c0_12, %c0_13] : memref<1x1xf32, #tpu.memory_space<vmem>>, vector<1x1xf32>
    %22 = vector.broadcast %21 : vector<1x1xf32> to vector<1x16xf32>
    %23 = arith.addf %20, %22 : vector<1x16xf32>
    %24 = arith.addf %23, %4 : vector<1x16xf32>
    %c0_14 = arith.constant 0 : index
    %c0_15 = arith.constant 0 : index
    %c0_16 = arith.constant 0 : index
    %25 = vector.load %arg6[%c0_14, %c0_15, %c0_16] : memref<1x1x16xf32, #tpu.memory_space<vmem>>, vector<1x1x16xf32>
    %26 = vector.shape_cast %25 : vector<1x1x16xf32> to vector<1x16xf32>
    %27 = vector.shape_cast %24 : vector<1x16xf32> to vector<1x1x16xf32>
    tpu.vector_store %arg6[%c0_14, %c0_15, %c0_16], %27 {strides = array<i32>} : memref<1x1x16xf32, #tpu.memory_space<vmem>>, vector<1x1x16xf32>,
    return
  }
  func.func @transform_0(%arg0: i32) -> (i32, i32, i32) {
    %c0_i32 = arith.constant 0 : i32
    %c0_i32_0 = arith.constant 0 : i32
    %c0_i32_1 = arith.constant 0 : i32
    return %arg0, %c0_i32, %c0_i32_0 : i32, i32, i32
  }
  func.func @transform_1(%arg0: i32) -> (i32, i32, i32) {
    %c0_i32 = arith.constant 0 : i32
    %c0_i32_0 = arith.constant 0 : i32
    %c0_i32_1 = arith.constant 0 : i32
    return %arg0, %c0_i32, %c0_i32_0 : i32, i32, i32
  }
  func.func @transform_2(%arg0: i32) -> (i32, i32) {
    %c0_i32 = arith.constant 0 : i32
    %c0_i32_0 = arith.constant 0 : i32
    %c0_i32_1 = arith.constant 0 : i32
    return %c0_i32, %c0_i32_0 : i32, i32
  }
  func.func @transform_3(%arg0: i32) -> (i32, i32) {
    %c0_i32 = arith.constant 0 : i32
    %c0_i32_0 = arith.constant 0 : i32
    %c0_i32_1 = arith.constant 0 : i32
    return %c0_i32, %c0_i32_0 : i32, i32
  }
  func.func @transform_4(%arg0: i32) -> (i32, i32) {
    %c0_i32 = arith.constant 0 : i32
    %c0_i32_0 = arith.constant 0 : i32
    %c0_i32_1 = arith.constant 0 : i32
    return %c0_i32, %c0_i32_0 : i32, i32
  }
  func.func @transform_5(%arg0: i32) -> (i32, i32, i32) {
    %c0_i32 = arith.constant 0 : i32
    %c0_i32_0 = arith.constant 0 : i32
    %c0_i32_1 = arith.constant 0 : i32
    return %arg0, %c0_i32, %c0_i32_0 : i32, i32, i32
  }
}

module attributes {stable_mosaic.version = 11 : i64} {
  func.func @_cub_kernel(%arg0: i32, %arg1: memref<1x8x64xf32, #tpu.memory_space<vmem>>, %arg2: memref<1x1x16xf32, #tpu.memory_space<vmem>>, %arg3: memref<16x64xbf16, #tpu.memory_space<vmem>>, %arg4: memref<8x1xf32, #tpu.memory_space<vmem>>, %arg5: memref<1x1xf32, #tpu.memory_space<vmem>>, %arg6: memref<1x1x64xf32, #tpu.memory_space<vmem>>) attributes {dimension_semantics = [#tpu.dimension_semantics<parallel>], iteration_bounds = array<i64: 2>, scalar_prefetch = 0 : i64, scratch_operands = 0 : i64, tpu.core_type = #tpu.core_type<tc>, window_params = [{transform_indices = @transform_0, window_bounds = array<i64: 1, 8, 64>}, {transform_indices = @transform_1, window_bounds = array<i64: 1, 1, 16>}, {pipeline_mode = #tpu.pipeline_mode<synchronous>, transform_indices = @transform_2, window_bounds = array<i64: 16, 64>}, {pipeline_mode = #tpu.pipeline_mode<synchronous>, transform_indices = @transform_3, window_bounds = array<i64: 8, 1>}, {pipeline_mode = #tpu.pipeline_mode<synchronous>, transform_indices = @transform_4, window_bounds = array<i64: 1, 1>}, {transform_indices = @transform_5, window_bounds = array<i64: 1, 1, 64>}]} {
    %c0 = arith.constant 0 : index
    %c0_0 = arith.constant 0 : index
    %c0_1 = arith.constant 0 : index
    %0 = vector.load %arg2[%c0, %c0_0, %c0_1] : memref<1x1x16xf32, #tpu.memory_space<vmem>>, vector<1x1x16xf32>
    %1 = vector.shape_cast %0 : vector<1x1x16xf32> to vector<1x16xf32>
    %2 = arith.truncf %1 : vector<1x16xf32> to vector<1x16xbf16>
    %c0_2 = arith.constant 0 : index
    %c0_3 = arith.constant 0 : index
    %3 = vector.load %arg3[%c0_2, %c0_3] : memref<16x64xbf16, #tpu.memory_space<vmem>>, vector<16x64xbf16>
    %cst = arith.constant dense<0.000000e+00> : vector<1x64xf32>
    %4 = tpu.matmul %2, %3, %cst {dimension_numbers = #tpu.dot_dimension_numbers<[1], [0], [0], [1], [0, 0, 1, 1], [], []>} : vector<1x16xbf16>, vector<16x64xbf16>, vector<1x64xf32> -> vector<1x64xf32>
    %5 = arith.negf %4 : vector<1x64xf32>
    %6 = math.exp %5 : vector<1x64xf32>
    %cst_4 = arith.constant 1.000000e+00 : f32
    %7 = vector.broadcast %cst_4 : f32 to vector<1x64xf32>
    %8 = arith.addf %7, %6 : vector<1x64xf32>
    %9 = arith.divf %7, %8 : vector<1x64xf32>
    %cst_5 = arith.constant 1.000000e+00 : f32
    %10 = vector.broadcast %cst_5 : f32 to vector<1x64xf32>
    %11 = arith.subf %10, %9 : vector<1x64xf32>
    %c0_6 = arith.constant 0 : index
    %c0_7 = arith.constant 0 : index
    %c0_8 = arith.constant 0 : index
    %12 = vector.load %arg1[%c0_6, %c0_7, %c0_8] : memref<1x8x64xf32, #tpu.memory_space<vmem>>, vector<1x8x64xf32>
    %13 = vector.shape_cast %12 : vector<1x8x64xf32> to vector<8x64xf32>
    %14 = vector.broadcast %11 : vector<1x64xf32> to vector<8x64xf32>
    %15 = arith.mulf %13, %14 : vector<8x64xf32>
    %c0_9 = arith.constant 0 : index
    %c0_10 = arith.constant 0 : index
    %16 = vector.load %arg4[%c0_9, %c0_10] : memref<8x1xf32, #tpu.memory_space<vmem>>, vector<8x1xf32>
    %17 = vector.broadcast %16 : vector<8x1xf32> to vector<8x64xf32>
    %18 = arith.mulf %15, %17 : vector<8x64xf32>
    %cst_11 = arith.constant dense<0.000000e+00> : vector<64xf32>
    %19 = vector.multi_reduction <add>, %18, %cst_11 [0] : vector<8x64xf32> to vector<64xf32>
    %20 = vector.shape_cast %19 : vector<64xf32> to vector<1x64xf32>
    %c0_12 = arith.constant 0 : index
    %c0_13 = arith.constant 0 : index
    %21 = vector.load %arg5[%c0_12, %c0_13] : memref<1x1xf32, #tpu.memory_space<vmem>>, vector<1x1xf32>
    %22 = vector.broadcast %21 : vector<1x1xf32> to vector<1x64xf32>
    %23 = arith.addf %20, %22 : vector<1x64xf32>
    %24 = arith.addf %23, %4 : vector<1x64xf32>
    %c0_14 = arith.constant 0 : index
    %c0_15 = arith.constant 0 : index
    %c0_16 = arith.constant 0 : index
    %25 = vector.load %arg6[%c0_14, %c0_15, %c0_16] : memref<1x1x64xf32, #tpu.memory_space<vmem>>, vector<1x1x64xf32>
    %26 = vector.shape_cast %25 : vector<1x1x64xf32> to vector<1x64xf32>
    %27 = vector.shape_cast %24 : vector<1x64xf32> to vector<1x1x64xf32>
    tpu.vector_store %arg6[%c0_14, %c0_15, %c0_16], %27 {strides = array<i32>} : memref<1x1x64xf32, #tpu.memory_space<vmem>>, vector<1x1x64xf32>,
    return
  }
  func.func @transform_0(%arg0: i32) -> (i32, i32, i32) {
    %c0_i32 = arith.constant 0 : i32
    %c0_i32_0 = arith.constant 0 : i32
    %c0_i32_1 = arith.constant 0 : i32
    return %arg0, %c0_i32, %c0_i32_0 : i32, i32, i32
  }
  func.func @transform_1(%arg0: i32) -> (i32, i32, i32) {
    %c0_i32 = arith.constant 0 : i32
    %c0_i32_0 = arith.constant 0 : i32
    %c0_i32_1 = arith.constant 0 : i32
    return %arg0, %c0_i32, %c0_i32_0 : i32, i32, i32
  }
  func.func @transform_2(%arg0: i32) -> (i32, i32) {
    %c0_i32 = arith.constant 0 : i32
    %c0_i32_0 = arith.constant 0 : i32
    %c0_i32_1 = arith.constant 0 : i32
    return %c0_i32, %c0_i32_0 : i32, i32
  }
  func.func @transform_3(%arg0: i32) -> (i32, i32) {
    %c0_i32 = arith.constant 0 : i32
    %c0_i32_0 = arith.constant 0 : i32
    %c0_i32_1 = arith.constant 0 : i32
    return %c0_i32, %c0_i32_0 : i32, i32
  }
  func.func @transform_4(%arg0: i32) -> (i32, i32) {
    %c0_i32 = arith.constant 0 : i32
    %c0_i32_0 = arith.constant 0 : i32
    %c0_i32_1 = arith.constant 0 : i32
    return %c0_i32, %c0_i32_0 : i32, i32
  }
  func.func @transform_5(%arg0: i32) -> (i32, i32, i32) {
    %c0_i32 = arith.constant 0 : i32
    %c0_i32_0 = arith.constant 0 : i32
    %c0_i32_1 = arith.constant 0 : i32
    return %arg0, %c0_i32, %c0_i32_0 : i32, i32, i32
  }
}

module attributes {stable_mosaic.version = 11 : i64} {
  func.func @_stage_kernel(%arg0: i32, %arg1: i32, %arg2: memref<1x3x256xf32, #tpu.memory_space<vmem>>, %arg3: memref<8x3xbf16, #tpu.memory_space<vmem>>, %arg4: memref<8x1xf32, #tpu.memory_space<vmem>>, %arg5: memref<4x8xbf16, #tpu.memory_space<vmem>>, %arg6: memref<4x1xf32, #tpu.memory_space<vmem>>, %arg7: memref<1x4x256xf32, #tpu.memory_space<vmem>>) attributes {dimension_semantics = [#tpu.dimension_semantics<parallel>, #tpu.dimension_semantics<parallel>], iteration_bounds = array<i64: 2, 1>, scalar_prefetch = 0 : i64, scratch_operands = 0 : i64, tpu.core_type = #tpu.core_type<tc>, window_params = [{transform_indices = @transform_0, window_bounds = array<i64: 1, 3, 256>}, {pipeline_mode = #tpu.pipeline_mode<synchronous>, transform_indices = @transform_1, window_bounds = array<i64: 8, 3>}, {pipeline_mode = #tpu.pipeline_mode<synchronous>, transform_indices = @transform_2, window_bounds = array<i64: 8, 1>}, {pipeline_mode = #tpu.pipeline_mode<synchronous>, transform_indices = @transform_3, window_bounds = array<i64: 4, 8>}, {pipeline_mode = #tpu.pipeline_mode<synchronous>, transform_indices = @transform_4, window_bounds = array<i64: 4, 1>}, {transform_indices = @transform_5, window_bounds = array<i64: 1, 4, 256>}]} {
    %c0 = arith.constant 0 : index
    %c0_0 = arith.constant 0 : index
    %c0_1 = arith.constant 0 : index
    %0 = vector.load %arg2[%c0, %c0_0, %c0_1] : memref<1x3x256xf32, #tpu.memory_space<vmem>>, vector<1x3x256xf32>
    %1 = vector.shape_cast %0 : vector<1x3x256xf32> to vector<3x256xf32>
    %2 = arith.truncf %1 : vector<3x256xf32> to vector<3x256xbf16>
    %c0_2 = arith.constant 0 : index
    %c0_3 = arith.constant 0 : index
    %3 = vector.load %arg3[%c0_2, %c0_3] : memref<8x3xbf16, #tpu.memory_space<vmem>>, vector<8x3xbf16>
    %cst = arith.constant dense<0.000000e+00> : vector<8x256xf32>
    %4 = tpu.matmul %3, %2, %cst {dimension_numbers = #tpu.dot_dimension_numbers<[1], [0], [0], [1], [0, 0, 1, 1], [], []>} : vector<8x3xbf16>, vector<3x256xbf16>, vector<8x256xf32> -> vector<8x256xf32>
    %c0_4 = arith.constant 0 : index
    %c0_5 = arith.constant 0 : index
    %5 = vector.load %arg4[%c0_4, %c0_5] : memref<8x1xf32, #tpu.memory_space<vmem>>, vector<8x1xf32>
    %6 = vector.broadcast %5 : vector<8x1xf32> to vector<8x256xf32>
    %7 = arith.addf %4, %6 : vector<8x256xf32>
    %cst_6 = arith.constant 0.000000e+00 : f32
    %8 = vector.broadcast %cst_6 : f32 to vector<8x256xf32>
    %9 = arith.maximumf %7, %8 : vector<8x256xf32>
    %c0_7 = arith.constant 0 : index
    %c0_8 = arith.constant 0 : index
    %10 = vector.load %arg5[%c0_7, %c0_8] : memref<4x8xbf16, #tpu.memory_space<vmem>>, vector<4x8xbf16>
    %11 = arith.truncf %9 : vector<8x256xf32> to vector<8x256xbf16>
    %cst_9 = arith.constant dense<0.000000e+00> : vector<4x256xf32>
    %12 = tpu.matmul %10, %11, %cst_9 {dimension_numbers = #tpu.dot_dimension_numbers<[1], [0], [0], [1], [0, 0, 1, 1], [], []>} : vector<4x8xbf16>, vector<8x256xbf16>, vector<4x256xf32> -> vector<4x256xf32>
    %c0_10 = arith.constant 0 : index
    %c0_11 = arith.constant 0 : index
    %13 = vector.load %arg6[%c0_10, %c0_11] : memref<4x1xf32, #tpu.memory_space<vmem>>, vector<4x1xf32>
    %14 = vector.broadcast %13 : vector<4x1xf32> to vector<4x256xf32>
    %15 = arith.addf %12, %14 : vector<4x256xf32>
    %cst_12 = arith.constant 0.000000e+00 : f32
    %16 = vector.broadcast %cst_12 : f32 to vector<4x256xf32>
    %17 = arith.maximumf %15, %16 : vector<4x256xf32>
    %c0_13 = arith.constant 0 : index
    %c0_14 = arith.constant 0 : index
    %c0_15 = arith.constant 0 : index
    %18 = vector.load %arg7[%c0_13, %c0_14, %c0_15] : memref<1x4x256xf32, #tpu.memory_space<vmem>>, vector<1x4x256xf32>
    %19 = vector.shape_cast %18 : vector<1x4x256xf32> to vector<4x256xf32>
    %20 = vector.shape_cast %17 : vector<4x256xf32> to vector<1x4x256xf32>
    tpu.vector_store %arg7[%c0_13, %c0_14, %c0_15], %20 {strides = array<i32>} : memref<1x4x256xf32, #tpu.memory_space<vmem>>, vector<1x4x256xf32>,
    return
  }
  func.func @transform_0(%arg0: i32, %arg1: i32) -> (i32, i32, i32) {
    %c0_i32 = arith.constant 0 : i32
    %c0_i32_0 = arith.constant 0 : i32
    return %arg0, %c0_i32, %arg1 : i32, i32, i32
  }
  func.func @transform_1(%arg0: i32, %arg1: i32) -> (i32, i32) {
    %c0_i32 = arith.constant 0 : i32
    %c0_i32_0 = arith.constant 0 : i32
    %c0_i32_1 = arith.constant 0 : i32
    return %c0_i32, %c0_i32_0 : i32, i32
  }
  func.func @transform_2(%arg0: i32, %arg1: i32) -> (i32, i32) {
    %c0_i32 = arith.constant 0 : i32
    %c0_i32_0 = arith.constant 0 : i32
    %c0_i32_1 = arith.constant 0 : i32
    return %c0_i32, %c0_i32_0 : i32, i32
  }
  func.func @transform_3(%arg0: i32, %arg1: i32) -> (i32, i32) {
    %c0_i32 = arith.constant 0 : i32
    %c0_i32_0 = arith.constant 0 : i32
    %c0_i32_1 = arith.constant 0 : i32
    return %c0_i32, %c0_i32_0 : i32, i32
  }
  func.func @transform_4(%arg0: i32, %arg1: i32) -> (i32, i32) {
    %c0_i32 = arith.constant 0 : i32
    %c0_i32_0 = arith.constant 0 : i32
    %c0_i32_1 = arith.constant 0 : i32
    return %c0_i32, %c0_i32_0 : i32, i32
  }
  func.func @transform_5(%arg0: i32, %arg1: i32) -> (i32, i32, i32) {
    %c0_i32 = arith.constant 0 : i32
    %c0_i32_0 = arith.constant 0 : i32
    return %arg0, %c0_i32, %arg1 : i32, i32, i32
  }
}

module attributes {stable_mosaic.version = 11 : i64} {
  func.func @_cub_kernel(%arg0: i32, %arg1: memref<1x4x256xf32, #tpu.memory_space<vmem>>, %arg2: memref<1x1x64xf32, #tpu.memory_space<vmem>>, %arg3: memref<64x256xbf16, #tpu.memory_space<vmem>>, %arg4: memref<4x1xf32, #tpu.memory_space<vmem>>, %arg5: memref<1x1xf32, #tpu.memory_space<vmem>>, %arg6: memref<1x1x256xf32, #tpu.memory_space<vmem>>) attributes {dimension_semantics = [#tpu.dimension_semantics<parallel>], iteration_bounds = array<i64: 2>, scalar_prefetch = 0 : i64, scratch_operands = 0 : i64, tpu.core_type = #tpu.core_type<tc>, window_params = [{transform_indices = @transform_0, window_bounds = array<i64: 1, 4, 256>}, {transform_indices = @transform_1, window_bounds = array<i64: 1, 1, 64>}, {pipeline_mode = #tpu.pipeline_mode<synchronous>, transform_indices = @transform_2, window_bounds = array<i64: 64, 256>}, {pipeline_mode = #tpu.pipeline_mode<synchronous>, transform_indices = @transform_3, window_bounds = array<i64: 4, 1>}, {pipeline_mode = #tpu.pipeline_mode<synchronous>, transform_indices = @transform_4, window_bounds = array<i64: 1, 1>}, {transform_indices = @transform_5, window_bounds = array<i64: 1, 1, 256>}]} {
    %c0 = arith.constant 0 : index
    %c0_0 = arith.constant 0 : index
    %c0_1 = arith.constant 0 : index
    %0 = vector.load %arg2[%c0, %c0_0, %c0_1] : memref<1x1x64xf32, #tpu.memory_space<vmem>>, vector<1x1x64xf32>
    %1 = vector.shape_cast %0 : vector<1x1x64xf32> to vector<1x64xf32>
    %2 = arith.truncf %1 : vector<1x64xf32> to vector<1x64xbf16>
    %c0_2 = arith.constant 0 : index
    %c0_3 = arith.constant 0 : index
    %3 = vector.load %arg3[%c0_2, %c0_3] : memref<64x256xbf16, #tpu.memory_space<vmem>>, vector<64x256xbf16>
    %cst = arith.constant dense<0.000000e+00> : vector<1x256xf32>
    %4 = tpu.matmul %2, %3, %cst {dimension_numbers = #tpu.dot_dimension_numbers<[1], [0], [0], [1], [0, 0, 1, 1], [], []>} : vector<1x64xbf16>, vector<64x256xbf16>, vector<1x256xf32> -> vector<1x256xf32>
    %5 = arith.negf %4 : vector<1x256xf32>
    %6 = math.exp %5 : vector<1x256xf32>
    %cst_4 = arith.constant 1.000000e+00 : f32
    %7 = vector.broadcast %cst_4 : f32 to vector<1x256xf32>
    %8 = arith.addf %7, %6 : vector<1x256xf32>
    %9 = arith.divf %7, %8 : vector<1x256xf32>
    %cst_5 = arith.constant 1.000000e+00 : f32
    %10 = vector.broadcast %cst_5 : f32 to vector<1x256xf32>
    %11 = arith.subf %10, %9 : vector<1x256xf32>
    %c0_6 = arith.constant 0 : index
    %c0_7 = arith.constant 0 : index
    %c0_8 = arith.constant 0 : index
    %12 = vector.load %arg1[%c0_6, %c0_7, %c0_8] : memref<1x4x256xf32, #tpu.memory_space<vmem>>, vector<1x4x256xf32>
    %13 = vector.shape_cast %12 : vector<1x4x256xf32> to vector<4x256xf32>
    %14 = vector.broadcast %11 : vector<1x256xf32> to vector<4x256xf32>
    %15 = arith.mulf %13, %14 : vector<4x256xf32>
    %c0_9 = arith.constant 0 : index
    %c0_10 = arith.constant 0 : index
    %16 = vector.load %arg4[%c0_9, %c0_10] : memref<4x1xf32, #tpu.memory_space<vmem>>, vector<4x1xf32>
    %17 = vector.broadcast %16 : vector<4x1xf32> to vector<4x256xf32>
    %18 = arith.mulf %15, %17 : vector<4x256xf32>
    %cst_11 = arith.constant dense<0.000000e+00> : vector<256xf32>
    %19 = vector.multi_reduction <add>, %18, %cst_11 [0] : vector<4x256xf32> to vector<256xf32>
    %20 = vector.shape_cast %19 : vector<256xf32> to vector<1x256xf32>
    %c0_12 = arith.constant 0 : index
    %c0_13 = arith.constant 0 : index
    %21 = vector.load %arg5[%c0_12, %c0_13] : memref<1x1xf32, #tpu.memory_space<vmem>>, vector<1x1xf32>
    %22 = vector.broadcast %21 : vector<1x1xf32> to vector<1x256xf32>
    %23 = arith.addf %20, %22 : vector<1x256xf32>
    %24 = arith.addf %23, %4 : vector<1x256xf32>
    %c0_14 = arith.constant 0 : index
    %c0_15 = arith.constant 0 : index
    %c0_16 = arith.constant 0 : index
    %25 = vector.load %arg6[%c0_14, %c0_15, %c0_16] : memref<1x1x256xf32, #tpu.memory_space<vmem>>, vector<1x1x256xf32>
    %26 = vector.shape_cast %25 : vector<1x1x256xf32> to vector<1x256xf32>
    %27 = vector.shape_cast %24 : vector<1x256xf32> to vector<1x1x256xf32>
    tpu.vector_store %arg6[%c0_14, %c0_15, %c0_16], %27 {strides = array<i32>} : memref<1x1x256xf32, #tpu.memory_space<vmem>>, vector<1x1x256xf32>,
    return
  }
  func.func @transform_0(%arg0: i32) -> (i32, i32, i32) {
    %c0_i32 = arith.constant 0 : i32
    %c0_i32_0 = arith.constant 0 : i32
    %c0_i32_1 = arith.constant 0 : i32
    return %arg0, %c0_i32, %c0_i32_0 : i32, i32, i32
  }
  func.func @transform_1(%arg0: i32) -> (i32, i32, i32) {
    %c0_i32 = arith.constant 0 : i32
    %c0_i32_0 = arith.constant 0 : i32
    %c0_i32_1 = arith.constant 0 : i32
    return %arg0, %c0_i32, %c0_i32_0 : i32, i32, i32
  }
  func.func @transform_2(%arg0: i32) -> (i32, i32) {
    %c0_i32 = arith.constant 0 : i32
    %c0_i32_0 = arith.constant 0 : i32
    %c0_i32_1 = arith.constant 0 : i32
    return %c0_i32, %c0_i32_0 : i32, i32
  }
  func.func @transform_3(%arg0: i32) -> (i32, i32) {
    %c0_i32 = arith.constant 0 : i32
    %c0_i32_0 = arith.constant 0 : i32
    %c0_i32_1 = arith.constant 0 : i32
    return %c0_i32, %c0_i32_0 : i32, i32
  }
  func.func @transform_4(%arg0: i32) -> (i32, i32) {
    %c0_i32 = arith.constant 0 : i32
    %c0_i32_0 = arith.constant 0 : i32
    %c0_i32_1 = arith.constant 0 : i32
    return %c0_i32, %c0_i32_0 : i32, i32
  }
  func.func @transform_5(%arg0: i32) -> (i32, i32, i32) {
    %c0_i32 = arith.constant 0 : i32
    %c0_i32_0 = arith.constant 0 : i32
    %c0_i32_1 = arith.constant 0 : i32
    return %arg0, %c0_i32, %c0_i32_0 : i32, i32, i32
  }
}

</mosaic_0001>

<bundles_post_ra>
// kernel: detector_forward.13
= control target key start
LH: loop header
LB: loop body
LE: loop exit
PB: predicated region body
PF: predicated region fallthrough
CT: control target
= control target key end

     0   :  { %10 = vsyncpa [#allocation3], 0  ;;  %s718_s18 = smov 0   ;;  %s720_s19 = smov 0   ;;  %s824_s0 = inlined_call_operand.vmem [shape: f32[2,3,16], index: 0, kind: input, shape index: {}]   ;;  %s825_s1 = inlined_call_operand.vmem [shape: bf16[32,3], index: 1, kind: input, shape index: {}]   ;;  %s826_s2 = inlined_call_operand.vmem [shape: f32[32,1], index: 2, kind: input, shape index: {}]   ;;  %s827_s3 = inlined_call_operand.hbm [shape: bf16[16,32], index: 3, kind: input, shape index: {}]   ;;  %s828_s4 = inlined_call_operand.vmem [shape: f32[16,1], index: 4, kind: input, shape index: {}]   ;;  %s829_s5 = inlined_call_operand.vmem [shape: f32[2,16,16], index: 5, kind: output, shape index: {}]  }
   0x1   :  { %s722_s20 = smov 0  }
   0x2 LB: > { %s540_s21 = sadd.s32 4294967295, %s679_s20   ;;  %s28_s22 = sadd.s32 1, %s675_s19  ;;  %s679_s20 = sphi %s722_s20, %s16_s20   ;;  %s675_s19 = sphi %s720_s19, %s839_s19   ;;  %s671_s18 = sphi %s718_s18, %s838_s18  }
   0x3   : > { %p30_p0 = scmp.ge.s32.totalorder %s28_s22, 2  ;;  %p542_p1 = scmp.ge.s32.totalorder %s679_s20, 1 }
   0x4   : > { %p173_p2 = scmp.lt.s32.totalorder %s679_s20, 3  ;;  %p743_p4 = scmp.eq.s32.totalorder %s540_s21, 0 }
   0x5   : > { %s841_s22 = smov (%p30_p0, %s28_s22), 0  ;;  %s681_s25 = smov [#allocation2]  }
   0x6   : > { %p739_p3 = pnand %p542_p1, %p173_p2  ;;  %s191_s26 = sshll.u32 %s681_s25, 4  ;;  %s192_s26 = int_to_ptr.vmem [resolvable:$true] %s191_s26 }
   0x7   : > { %s834_s24 = scalar_select %p743_p4, 1, 0 }
   0x8   : > { %s833_s23 = scalar_select %p739_p3, 1, 0 }
   0x9   : > { %p583_p5 = pneg %p739_p3  ;;  %s625_s30 = scalar_lea.hbm %s827_s3, 128 }
   0xa   : > { %p626_p7 = scmp.ne.s32.totalorder %s827_s3, %s625_s30  ;;  %p632_p11 = scmp.lt.u32.totalorder %s625_s30, %s827_s3 }
   0xb   : > { %p751_p6 = pnand %p743_p4, %p583_p5 }
   0xd   : > { %p627_p8 = pneg %p751_p6 }
   0xf   : > { %p628_p9 = pnand %p627_p8, %p626_p7 }
  0x11   : > { %p629_p10 = pneg %p628_p9 }
  0x13   : > { %p634_p12 = pnand %p632_p11, %p629_p10 }
  0x15   : > { %637 = shalt.err (!%p634_p12)
}
  0x16   : > { %s638_s10 = scalar_lea.vmem %s192_s26, 128  ;;  %p646_p2 = scmp.lt.s32.totalorder %s192_s26, %s192_s26 }
  0x17   : > { %p639_p13 = scmp.ne.s32.totalorder %s192_s26, %s638_s10  ;;  %p647_p5 = scmp.lt.s32.totalorder %s638_s10, %s638_s10 }
  0x19   : > { %p641_p0 = pnand %p639_p13, %p627_p8  ;;  %p648_p4 = por %p647_p5, %p646_p2 }
  0x1b   : > { %p642_p1 = pneg %p641_p0 }
  0x1d   : > { %p649_p3 = pnand %p648_p4, %p642_p1 }
  0x1f   : > { %652 = shalt.err (!%p649_p3)
}
  0x20   : > { %s682_s11 = smov 64   ;;  %s683_s12 = smov 4  }
  0x21   : > { %586 = dma.hbm_to_vmem [thread:$0]  (!%p751_p6), %s827_s3, 128, %s192_s26, [#allocation3], %s682_s11, %s682_s11, %s683_s12  }
  0x22   : > { %p836_p7 = scmp.ne.s32.totalorder %s833_s23, 0 }
  0x23   : > { %p837_p9 = scmp.ne.s32.totalorder (!%p836_p7), %s834_s24, 0 }
  0x24   : > { %220 = sbr.rel (%p836_p7) target bundleno = 505 (0x1f9), region = 40 }
  0x2b   : > { %666 = dma.done.wait (%p837_p9), [#allocation3], 128  }
  0x2c   : > { %668 = vsyncadd (%p837_p9), [#allocation3], 4294967168  ;;  %p253_p3 = scmp.lt.s32.totalorder %s671_s18, 1  ;;  %vm316_vm0 = vcmask 1040384   ;;  %v684_v0 = vmov 0   ;;  %vm317_vm1 = vcmask 1041408  }
  0x2d   : > { %620 = vset.pattern.permute.xlu0 %v684_v0  ;;  %621 = vset.pattern.permute.xlu1 %v684_v0  ;;  %v685_v1 = vmov 65535   ;;  %vm309_vm2 = vcmask 23552   ;;  %v622_v6 = vld [vmem:[%s825_s1] sm:$0xff]   ;;  %v277_v8 = vld [vmem:[%s826_s2 + $0x10] sm:$0xff]  ;;  %v276_v10 = vld [vmem:[%s826_s2 + $0x8] sm:$0xff]  ;;  %v686_v15 = vmov 0.0  }
  0x2e   : > { %s843_s18 = smov (!%p253_p3, %s671_s18), 1  ;;  %v318_v2 = vsel %vm316_vm0, 4294967295, %v685_v1  ;;  %v275_v7 = vld [vmem:[%s826_s2] sm:$0xff]  ;;  %567 = vmatprep.mubr.msk.bf16.mxu0 %vm309_vm2, %v622_v6  ;;  %291 = vperm.xlu1 %621, %v277_v8   ;;  %v623_v11 = vld [vmem:[%s825_s1 + $0x8] sm:$0xff]   ;;  %v278_v12 = vld [vmem:[%s826_s2 + $0x18] sm:$0xff]  ;;  %vm687_vm3 = vmmov 0  }
  0x2f   : > { %s547_s15 = sshll.u32 %s843_s18, 2  ;;  %v319_v3 = vsel %vm317_vm1, %v318_v2, 0  ;;  %281 = vperm.xlu0 %620, %v275_v7   ;;  %v380_v13 = vld [vmem:[%s828_s4] sm:$0xff]  ;;  %v381_v14 = vld [vmem:[%s828_s4 + $0x8] sm:$0xff]  ;;  %571 = vmatprep.subr.bf16.mxu1 %v686_v15  ;;  %vm397_vm4 = vcmask 261120   ;;  %s558_s14 = sshll.u32 %s843_s18, 4 }
  0x30   : > { %s259_s21 = scalar_lea.vmem %s824_s0, %s547_s15  ;;  %575 = vmatprep.mubr.msk.bf16.mxu1 %vm687_vm3, %v686_v15  ;;  %v624_v34 = vld [vmem:[#allocation2] sm:$0xff]   ;;  %s267_s17 = scalar_lea.vmem %s829_s5, %s558_s14  ;;  %vm444_vm5 = vcmask 130048  }
  0x31   : > { %v269_v4 = vld [vmem:[%s259_s21] sm:$0x7] }
  0x32   : > { %v270_v5 = vpack.c.bf16 %v269_v4, %v269_v4  ;;  %296 = vperm.xlu1 %621, %v278_v12  }
  0x33   : > { %286 = vperm.xlu0 %620, %v276_v10  }
  0x34   : > { %v321_v9 = vand.u32 %v319_v3, %v270_v5 }
  0x36   : > { %565 = vmatprep.subr.bf16.mxu0 %v321_v9  ;;  %389 = vperm.xlu1 %621, %v381_v14  }
  0x37   : > { %566 = vmatpush3.bf16.msra.mxu0 %v321_v9  ;;  %384 = vperm.xlu0 %620, %v380_v13  }
  0x3a   : > { %568 = vmatmul.mubr.msk.bf16.vlgmr.msra.gmra.mrb[0].mxu0 %vm309_vm2, %v623_v11 }
  0xad   : > { %v292_v16 = vpop.permute.xlu1 %291 }
  0xae   : > { %v282_v17 = vpop.permute.xlu0 %281 }
  0xb1   : > { %v297_v21 = vpop.permute.xlu1 %296 }
  0xb2   : > { %v287_v24 = vpop.permute.xlu0 %286 }
  0xb5   : > { %v390_v39 = vpop.permute.xlu1 %389 }
  0xb6   : > { %v385_v35 = vpop.permute.xlu0 %384 }
 0x10d   : > { %v569_v18 = vpop.f32.mrb[0].mxu0 }
 0x10e   : > { %v366_v19 = vadd.f32 %v569_v18, %v292_v16  ;;  %v357_v20 = vpop.f32.mrb[1].mxu0 }
 0x10f   : > { %v358_v22 = vadd.f32 %v357_v20, %v282_v17  ;;  %v570_v23 = vpop.f32.mrb[2].mxu0 }
 0x110   : > { %v369_v25 = vadd.f32 %v570_v23, %v297_v21  ;;  %v360_v26 = vpop.f32.mrb[3].mxu0  ;;  %v374_v28 = vmax.f32 %v366_v19, 0.0 }
 0x111   : > { %v361_v27 = vadd.f32 %v360_v26, %v287_v24  ;;  %v372_v30 = vmax.f32 %v358_v22, 0.0 }
 0x112   : > { %v375_v29 = vmax.f32 %v369_v25, 0.0 }
 0x113   : > { %v373_v31 = vmax.f32 %v361_v27, 0.0 }
 0x114   : > { %v379_v32 = vpack.c.bf16 %v375_v29, %v374_v28 }
 0x115   : > { %v378_v33 = vpack.c.bf16 %v373_v31, %v372_v30 }
 0x117   : > { %572 = vmatpush3.bf16.msra.mxu1 %v378_v33 }
 0x118   : > { %573 = vmatprep.subr.bf16.mxu1 %v686_v15 }
 0x11b   : > { %574 = vmatpush3.bf16.msra.mxu1 %v379_v32 }
 0x11e   : > { %576 = vmatmul.mubr.msk.bf16.vlgmr.msra.gmra.mrb[0].mxu1 %vm397_vm4, %v624_v34 }
 0x1f1   : > { %v435_v36 = vpop.f32.mrb[0].mxu1 }
 0x1f2   : > { %v436_v37 = vadd.f32 %v435_v36, %v385_v35  ;;  %v577_v38 = vpop.f32.mrb[1].mxu1 }
 0x1f3   : > { %v438_v40 = vpop.f32.mrb[2].mxu1 }
 0x1f4   : > { %v442_v41 = vmax.f32 %v436_v37, 0.0  ;;  %v439_v42 = vadd.f32 %v438_v40, %v390_v39  ;;  %v578_v43 = vpop.f32.mrb[3].mxu1 }
 0x1f6   : > { %445 = vst.msk [vmem:[%s267_s17] sm:$0xff] %vm444_vm5, %v442_v41  ;;  %v443_v44 = vmax.f32 %v439_v42, 0.0 }
 0x1f8   : > { %446 = vst.msk [vmem:[%s267_s17 + $0x8] sm:$0xff] %vm444_vm5, %v443_v44 }
 0x1f9 PF: > { %s16_s20 = sadd.s32 1, %s679_s20   ;;  %s838_s18 = smov %s675_s19 }
 0x1fa   : > { %p13_p4 = scmp.ge.s32.totalorder %s16_s20, 4   ;;  %s839_s19 = smov %s841_s22 }
 0x1fc   :  { %15 = sbr.rel (!%p13_p4) target bundleno = 2 (0x2), region = 75 }
 0x203   :  { %474 = vsyncpa [#allocation3], 1 }
 0x204   :  { %476 = vsyncpa [#allocation3 + $0x1], 1 }

// kernel: detector_forward.15
= control target key start
LH: loop header
LB: loop body
LE: loop exit
PB: predicated region body
PF: predicated region fallthrough
CT: control target
= control target key end

     0   :  { %s349_s12 = smov 0   ;;  %s372_s0 = inlined_call_operand.vmem [shape: f32[2,32,4], index: 0, kind: input, shape index: {}]   ;;  %s373_s1 = inlined_call_operand.vmem [shape: bf16[8,32], index: 1, kind: input, shape index: {}]   ;;  %s374_s2 = inlined_call_operand.vmem [shape: f32[8,1], index: 2, kind: input, shape index: {}]   ;;  %s375_s3 = inlined_call_operand.vmem [shape: f32[2,8,4], index: 3, kind: output, shape index: {}]  }
   0x1 LB: > { %s283_s13 = sadd.s32 4294967295, %s324_s12   ;;  %p287_p0 = scmp.ge.s32.totalorder %s324_s12, 1  ;;  %s324_s12 = sphi %s349_s12, %s13_s12  }
   0x2   : > { %p137_p1 = scmp.lt.s32.totalorder %s324_s12, 3 }
   0x4   : > { %p138_p2 = pnand %p287_p0, %p137_p1 }
   0x5   : > { %p160_p3 = scmp.lt.s32.totalorder (!%p138_p2), %s283_s13, 1  ;;  %v326_v0 = vmov (!%p138_p2), 0.0   ;;  %vm327_vm0 = vmmov (!%p138_p2), 0   ;;  %v177_v1 = vld [vmem:[%s374_s2] sm:$0xff] (!%p138_p2)  ;;  %v328_v2 = vmov (!%p138_p2), 0   ;;  %vm183_vm1 = vcmask (!%p138_p2), 261120  }
   0x6   : > { %141 = sbr.rel (%p138_p2) target bundleno = 243 (0xf3), region = 32  ;;  %298 = vmatprep.subr.bf16.mxu0 (!%p138_p2), %v326_v0  ;;  %302 = vmatprep.mubr.msk.bf16.mxu0 (!%p138_p2), %vm327_vm0, %v326_v0  ;;  %v170_v9 = vld [vmem:[%s373_s1] sm:$0xf] (!%p138_p2)  ;;  %vm228_vm2 = vcmask (!%p138_p2), 31744  }
   0x7   : > { %317 = vset.pattern.permute.xlu0 (!%p138_p2), %v328_v2 }
   0x8   : > { %180 = vperm.xlu0 (!%p138_p2), %317, %v177_v1  }
   0xd   : > { %s377_s13 = smov (!%p160_p3, %s283_s13), 1 }
   0xe   : > { %s294_s16 = sshll.u32 %s377_s13, 5  ;;  %s290_s22 = sshll.u32 %s377_s13, 3 }
   0xf   : > { %s164_s19 = scalar_lea.vmem %s372_s0, %s294_s16  ;;  %s168_s25 = scalar_lea.vmem %s375_s3, %s290_s22 }
  0x10   : > { %v171_v3 = vld [vmem:[%s164_s19] sm:$0xff]  ;;  %v172_v4 = vld [vmem:[%s164_s19 + $0x8] sm:$0xff]  ;;  %v173_v5 = vld [vmem:[%s164_s19 + $0x10] sm:$0xff] }
  0x11   : > { %v175_v6 = vpack.c.bf16 %v172_v4, %v171_v3  ;;  %v174_v7 = vld [vmem:[%s164_s19 + $0x18] sm:$0xff] }
  0x12   : > { %v176_v8 = vpack.c.bf16 %v174_v7, %v173_v5 }
  0x13   : > { %299 = vmatpush3.bf16.msra.mxu0 %v175_v6 }
  0x14   : > { %300 = vmatprep.subr.bf16.mxu0 %v326_v0 }
  0x17   : > { %301 = vmatpush3.bf16.msra.mxu0 %v176_v8 }
  0x1a   : > { %303 = vmatmul.mubr.msk.bf16.vlgmr.msra.gmra.mrb[0].mxu0 %vm183_vm1, %v170_v9 }
  0x87   : > { %v181_v10 = vpop.permute.xlu0 %180 }
  0xed   : > { %v221_v11 = vpop.f32.mrb[0].mxu0 }
  0xee   : > { %v222_v12 = vadd.f32 %v221_v11, %v181_v10  ;;  %v304_v13 = vpop.f32.mrb[1].mxu0 }
  0xef   : > { %v224_v14 = vpop.f32.mrb[2].mxu0 }
  0xf0   : > { %v227_v15 = vmax.f32 %v222_v12, 0.0  ;;  %v305_v16 = vpop.f32.mrb[3].mxu0 }
  0xf2   : > { %229 = vst.msk [vmem:[%s168_s25] sm:$0xff] %vm228_vm2, %v227_v15 }
  0xf3 PF: > { %s13_s12 = sadd.s32 1, %s324_s12  }
  0xf4   : > { %p10_p4 = scmp.ge.s32.totalorder %s13_s12, 4  }
  0xf6   :  { %12 = sbr.rel (!%p10_p4) target bundleno = 1 (0x1), region = 62 }

// kernel: detector_forward.14
= control target key start
LH: loop header
LB: loop body
LE: loop exit
PB: predicated region body
PF: predicated region fallthrough
CT: control target
= control target key end

     0   :  { %s758_s18 = smov 0   ;;  %s760_s19 = smov 0   ;;  %s855_s0 = inlined_call_operand.vmem [shape: f32[2,3,4], index: 0, kind: input, shape index: {}]   ;;  %s856_s1 = inlined_call_operand.vmem [shape: bf16[64,3], index: 1, kind: input, shape index: {}]   ;;  %s857_s2 = inlined_call_operand.vmem [shape: f32[64,1], index: 2, kind: input, shape index: {}]   ;;  %s858_s3 = inlined_call_operand.vmem [shape: bf16[32,64], index: 3, kind: input, shape index: {}]   ;;  %s859_s4 = inlined_call_operand.vmem [shape: f32[32,1], index: 4, kind: input, shape index: {}]   ;;  %s860_s5 = inlined_call_operand.vmem [shape: f32[2,32,4], index: 5, kind: output, shape index: {}]  }
   0x1   :  { %s762_s20 = smov 0  }
   0x2 LB: > { %s27_s21 = sadd.s32 1, %s720_s19  ;;  %p616_p0 = scmp.ge.s32.totalorder %s724_s20, 1  ;;  %s724_s20 = sphi %s762_s20, %s15_s20   ;;  %s720_s19 = sphi %s760_s19, %s862_s19   ;;  %s716_s18 = sphi %s758_s18, %s861_s18  }
   0x3   : > { %p29_p1 = scmp.ge.s32.totalorder %s27_s21, 2  ;;  %p205_p2 = scmp.lt.s32.totalorder %s724_s20, 3 }
   0x5   : > { %s864_s21 = smov (%p29_p1, %s27_s21), 0  ;;  %p206_p3 = pnand %p616_p0, %p205_p2 }
   0x6   : > { %p238_p4 = scmp.lt.s32.totalorder (!%p206_p3), %s716_s18, 1  ;;  %vm345_vm0 = vcmask (!%p206_p3), 1040384   ;;  %v696_v0 = vld [vmem:[%s856_s1] sm:$0xff] (!%p206_p3)   ;;  %vm332_vm1 = vcmask (!%p206_p3), 23552   ;;  %vm346_vm2 = vcmask (!%p206_p3), 1041408   ;;  %v726_v1 = vmov (!%p206_p3), 65535  }
   0x7   : > { %209 = sbr.rel (%p206_p3) target bundleno = 483 (0x1e3), region = 40  ;;  %v347_v2 = vsel (!%p206_p3), %vm345_vm0, 4294967295, %v726_v1  ;;  %648 = vmatprep.mubr.msk.bf16.mxu0 (!%p206_p3), %vm332_vm1, %v696_v0  ;;  %v727_v3 = vmov (!%p206_p3), 0   ;;  %v264_v4 = vld [vmem:[%s857_s2] sm:$0xff] (!%p206_p3)  ;;  %v266_v5 = vld [vmem:[%s857_s2 + $0x10] sm:$0xff] (!%p206_p3)  ;;  %v265_v9 = vld [vmem:[%s857_s2 + $0x8] sm:$0xff] (!%p206_p3) }
   0x8   : > { %694 = vset.pattern.permute.xlu0 (!%p206_p3), %v727_v3  ;;  %695 = vset.pattern.permute.xlu1 (!%p206_p3), %v727_v3  ;;  %v348_v7 = vsel (!%p206_p3), %vm346_vm2, %v347_v2, 0  ;;  %v267_v10 = vld [vmem:[%s857_s2 + $0x18] sm:$0xff] (!%p206_p3)  ;;  %v697_v12 = vld [vmem:[%s856_s1 + $0x8] sm:$0xff] (!%p206_p3)   ;;  %v268_v13 = vld [vmem:[%s857_s2 + $0x20] sm:$0xff] (!%p206_p3)  ;;  %vm467_vm3 = vcmask (!%p206_p3), 523264   ;;  %vm527_vm4 = vcmask (!%p206_p3), 31744  }
   0x9   : > { %274 = vperm.xlu0 (!%p206_p3), %694, %v264_v4   ;;  %284 = vperm.xlu1 (!%p206_p3), %695, %v266_v5   ;;  %v269_v14 = vld [vmem:[%s857_s2 + $0x28] sm:$0xff] (!%p206_p3)  ;;  %v698_v15 = vld [vmem:[%s856_s1 + $0x10] sm:$0xff] (!%p206_p3)   ;;  %v271_v17 = vld [vmem:[%s857_s2 + $0x38] sm:$0xff] (!%p206_p3) }
   0xa   : > { %v270_v16 = vld [vmem:[%s857_s2 + $0x30] sm:$0xff] (!%p206_p3)  ;;  %v699_v18 = vld [vmem:[%s856_s1 + $0x18] sm:$0xff] (!%p206_p3)   ;;  %v433_v19 = vld [vmem:[%s859_s4] sm:$0xff] (!%p206_p3) }
   0xb   : > { %v434_v20 = vld [vmem:[%s859_s4 + $0x8] sm:$0xff] (!%p206_p3)  ;;  %v435_v21 = vld [vmem:[%s859_s4 + $0x10] sm:$0xff] (!%p206_p3)  ;;  %v436_v22 = vld [vmem:[%s859_s4 + $0x18] sm:$0xff] (!%p206_p3) }
   0xc   : > { %v700_v23 = vld [vmem:[%s858_s3] sm:$0xff] (!%p206_p3)   ;;  %v701_v60 = vld [vmem:[%s858_s3 + $0x8] sm:$0xff] (!%p206_p3)  }
   0xd   : > { %279 = vperm.xlu0 (!%p206_p3), %694, %v265_v9   ;;  %289 = vperm.xlu1 (!%p206_p3), %695, %v267_v10  }
   0xe   : > { %s866_s18 = smov (!%p238_p4, %s716_s18), 1  ;;  %664 = vmatprep.mubr.msk.bf16.mxu1 %vm467_vm3, %v700_v23 }
   0xf   : > { %s617_s24 = sshll.u32 %s866_s18, 2  ;;  %s634_s16 = sshll.u32 %s866_s18, 5 }
  0x10   : > { %s244_s27 = scalar_lea.vmem %s855_s0, %s617_s24  ;;  %s252_s23 = scalar_lea.vmem %s860_s5, %s634_s16 }
  0x11   : > { %v254_v6 = vld [vmem:[%s244_s27] sm:$0x7]  ;;  %294 = vperm.xlu0 %694, %v268_v13   ;;  %299 = vperm.xlu1 %695, %v269_v14  }
  0x12   : > { %v255_v8 = vpack.c.bf16 %v254_v6, %v254_v6 }
  0x14   : > { %v350_v11 = vand.u32 %v348_v7, %v255_v8 }
  0x15   : > { %304 = vperm.xlu0 %694, %v270_v16   ;;  %309 = vperm.xlu1 %695, %v271_v17  }
  0x16   : > { %646 = vmatprep.subr.bf16.mxu0 %v350_v11 }
  0x17   : > { %647 = vmatpush3.bf16.msra.mxu0 %v350_v11 }
  0x19   : > { %439 = vperm.xlu0 %694, %v433_v19   ;;  %444 = vperm.xlu1 %695, %v434_v20  }
  0x1a   : > { %649 = vmatmul.mubr.msk.bf16.vlgmr.msra.gmra.mrb[0].mxu0 %vm332_vm1, %v697_v12 }
  0x1b   : > { %652 = vmatprep.mubr.msk.bf16.mxu0 %vm332_vm1, %v698_v15 }
  0x1d   : > { %449 = vperm.xlu0 %694, %v435_v21   ;;  %454 = vperm.xlu1 %695, %v436_v22  }
  0x22   : > { %653 = vmatmul.mubr.msk.bf16.gmra.mrb[4].mxu0 %vm332_vm1, %v699_v18 }
  0x88   : > { %v275_v24 = vpop.permute.xlu0 %274  ;;  %v285_v25 = vpop.permute.xlu1 %284 }
  0x8c   : > { %v280_v26 = vpop.permute.xlu0 %279  ;;  %v290_v27 = vpop.permute.xlu1 %289 }
  0x90   : > { %v295_v31 = vpop.permute.xlu0 %294  ;;  %v300_v36 = vpop.permute.xlu1 %299 }
  0x94   : > { %v305_v43 = vpop.permute.xlu0 %304  ;;  %v310_v48 = vpop.permute.xlu1 %309 }
  0x98   : > { %v440_v61 = vpop.permute.xlu0 %439  ;;  %v445_v62 = vpop.permute.xlu1 %444 }
  0x9c   : > { %v450_v63 = vpop.permute.xlu0 %449  ;;  %v455_v3 = vpop.permute.xlu1 %454 }
  0xed   : > { %v650_v28 = vpop.f32.mrb[0].mxu0 }
  0xee   : > { %v395_v29 = vadd.f32 %v650_v28, %v285_v25  ;;  %v386_v30 = vpop.f32.mrb[1].mxu0 }
  0xef   : > { %v387_v32 = vadd.f32 %v386_v30, %v275_v24  ;;  %v651_v33 = vpop.f32.mrb[2].mxu0 }
  0xf0   : > { %v398_v34 = vadd.f32 %v651_v33, %v290_v27  ;;  %v389_v35 = vpop.f32.mrb[3].mxu0  ;;  %v419_v38 = vmax.f32 %v395_v29, 0.0 }
  0xf1   : > { %v390_v37 = vadd.f32 %v389_v35, %v280_v26  ;;  %v417_v40 = vmax.f32 %v387_v32, 0.0 }
  0xf2   : > { %v420_v39 = vmax.f32 %v398_v34, 0.0 }
  0xf3   : > { %v418_v41 = vmax.f32 %v390_v37, 0.0 }
  0xf4   : > { %v430_v42 = vpack.c.bf16 %v420_v39, %v419_v38 }
  0xf5   : > { %v654_v44 = vpop.f32.mrb[4].mxu0  ;;  %v429_v45 = vpack.c.bf16 %v418_v41, %v417_v40 }
  0xf6   : > { %v411_v46 = vadd.f32 %v654_v44, %v305_v43  ;;  %v402_v47 = vpop.f32.mrb[5].mxu0 }
  0xf7   : > { %v403_v49 = vadd.f32 %v402_v47, %v295_v31  ;;  %v655_v50 = vpop.f32.mrb[6].mxu0  ;;  %656 = vmatprep.subr.bf16.mxu1 %v429_v45 }
  0xf8   : > { %v414_v51 = vadd.f32 %v655_v50, %v310_v48  ;;  %v405_v52 = vpop.f32.mrb[7].mxu0  ;;  %657 = vmatpush3.bf16.msra.mxu1 %v429_v45  ;;  %v423_v54 = vmax.f32 %v411_v46, 0.0 }
  0xf9   : > { %v406_v53 = vadd.f32 %v405_v52, %v300_v36  ;;  %658 = vmatprep.subr.bf16.mxu1 %v430_v42  ;;  %v421_v56 = vmax.f32 %v403_v49, 0.0 }
  0xfa   : > { %v424_v55 = vmax.f32 %v414_v51, 0.0 }
  0xfb   : > { %v422_v57 = vmax.f32 %v406_v53, 0.0 }
  0xfc   : > { %v432_v58 = vpack.c.bf16 %v424_v55, %v423_v54  ;;  %659 = vmatpush3.bf16.msra.mxu1 %v430_v42 }
  0xfd   : > { %v431_v59 = vpack.c.bf16 %v422_v57, %v421_v56 }
  0xff   : > { %660 = vmatprep.subr.bf16.mxu1 %v431_v59 }
 0x100   : > { %661 = vmatpush3.bf16.msra.mxu1 %v431_v59 }
 0x101   : > { %662 = vmatprep.subr.bf16.mxu1 %v432_v58 }
 0x104   : > { %663 = vmatpush3.bf16.msra.mxu1 %v432_v58 }
 0x107   : > { %665 = vmatmul.mubr.msk.bf16.vlgmr.msra.gmra.mrb[0].mxu1 %vm467_vm3, %v701_v60 }
 0x1da   : > { %v666_v0 = vpop.f32.mrb[0].mxu1 }
 0x1db   : > { %v517_v1 = vadd.f32 %v666_v0, %v450_v63  ;;  %v508_v2 = vpop.f32.mrb[1].mxu1 }
 0x1dc   : > { %v509_v4 = vadd.f32 %v508_v2, %v440_v61  ;;  %v667_v5 = vpop.f32.mrb[2].mxu1 }
 0x1dd   : > { %v525_v6 = vmax.f32 %v517_v1, 0.0  ;;  %v520_v7 = vadd.f32 %v667_v5, %v455_v3  ;;  %v511_v8 = vpop.f32.mrb[3].mxu1 }
 0x1de   : > { %v523_v9 = vmax.f32 %v509_v4, 0.0  ;;  %v512_v10 = vadd.f32 %v511_v8, %v445_v62 }
 0x1df   : > { %530 = vst.msk [vmem:[%s252_s23 + $0x10] sm:$0xff] %vm527_vm4, %v525_v6  ;;  %v526_v11 = vmax.f32 %v520_v7, 0.0 }
 0x1e0   : > { %528 = vst.msk [vmem:[%s252_s23] sm:$0xff] %vm527_vm4, %v523_v9  ;;  %v524_v12 = vmax.f32 %v512_v10, 0.0 }
 0x1e1   : > { %531 = vst.msk [vmem:[%s252_s23 + $0x18] sm:$0xff] %vm527_vm4, %v526_v11 }
 0x1e2   : > { %529 = vst.msk [vmem:[%s252_s23 + $0x8] sm:$0xff] %vm527_vm4, %v524_v12 }
 0x1e3 PF: > { %s15_s20 = sadd.s32 1, %s724_s20   ;;  %s861_s18 = smov %s720_s19 }
 0x1e4   : > { %p12_p5 = scmp.ge.s32.totalorder %s15_s20, 4   ;;  %s862_s19 = smov %s864_s21 }
 0x1e6   :  { %14 = sbr.rel (!%p12_p5) target bundleno = 2 (0x2), region = 70 }

// kernel: detector_forward.16
= control target key start
LH: loop header
LB: loop body
LE: loop exit
PB: predicated region body
PF: predicated region fallthrough
CT: control target
= control target key end

     0   :  { %s497_s18 = smov 0   ;;  %s532_s0 = inlined_call_operand.vmem [shape: f32[2,16,16], index: 0, kind: input, shape index: {}]   ;;  %s533_s1 = inlined_call_operand.vmem [shape: f32[2,8,4], index: 1, kind: input, shape index: {}]   ;;  %s534_s2 = inlined_call_operand.vmem [shape: bf16[4,16], index: 2, kind: input, shape index: {}]   ;;  %s535_s3 = inlined_call_operand.vmem [shape: bf16[8,16], index: 3, kind: input, shape index: {}]   ;;  %s536_s4 = inlined_call_operand.vmem [shape: f32[8,1], index: 4, kind: input, shape index: {}]   ;;  %s537_s5 = inlined_call_operand.vmem [shape: f32[2,8,16], index: 5, kind: output, shape index: {}]  }
   0x1 LB: > { %s414_s19 = sadd.s32 4294967295, %s462_s18   ;;  %p418_p0 = scmp.ge.s32.totalorder %s462_s18, 1  ;;  %s462_s18 = sphi %s497_s18, %s15_s18  }
   0x2   : > { %p196_p1 = scmp.lt.s32.totalorder %s462_s18, 3 }
   0x4   : > { %p197_p2 = pnand %p418_p0, %p196_p1 }
   0x5   : > { %p227_p3 = scmp.lt.s32.totalorder (!%p197_p2), %s414_s19, 1  ;;  %v298_v0 = vld [vmem:[%s534_s2] sm:$0x3] (!%p197_p2)  ;;  %vm303_vm0 = vcmask (!%p197_p2), 1041408   ;;  %v464_v1 = vmov (!%p197_p2), 0.0   ;;  %vm465_vm1 = vmmov (!%p197_p2), 0  }
   0x6   : > { %200 = sbr.rel (%p197_p2) target bundleno = 241 (0xf1), region = 40  ;;  %432 = vmatprep.subr.bf16.mxu0 (!%p197_p2), %v464_v1  ;;  %438 = vmatprep.subr.bf16.mxu1 (!%p197_p2), %v464_v1  ;;  %v305_v2 = vsel (!%p197_p2), %vm303_vm0, %v298_v0, 0  ;;  %v245_v3 = vld [vmem:[%s536_s4] sm:$0xff] (!%p197_p2)  ;;  %v466_v4 = vmov (!%p197_p2), 0   ;;  %vm299_vm2 = vcmask (!%p197_p2), 31744   ;;  %vm251_vm3 = vcmask (!%p197_p2), 130048  }
   0x7   : > { %439 = vmatpush3.bf16.msra.mxu1 (!%p197_p2), %v305_v2  ;;  %434 = vmatprep.mubr.msk.bf16.mxu0 (!%p197_p2), %vm465_vm1, %v464_v1  ;;  %v241_v10 = vld [vmem:[%s535_s3] sm:$0xf] (!%p197_p2) }
   0x8   : > { %440 = vmatprep.mubr.msk.bf16.mxu1 (!%p197_p2), %vm465_vm1, %v464_v1  ;;  %455 = vset.pattern.permute.xlu0 (!%p197_p2), %v466_v4 }
   0x9   : > { %248 = vperm.xlu0 (!%p197_p2), %455, %v245_v3  }
   0xd   : > { %s539_s19 = smov (!%p227_p3, %s414_s19), 1 }
   0xe   : > { %s427_s24 = sshll.u32 %s539_s19, 4  ;;  %s421_s25 = sshll.u32 %s539_s19, 3 }
   0xf   : > { %s231_s28 = scalar_lea.vmem %s532_s0, %s427_s24  ;;  %s235_s6 = scalar_lea.vmem %s533_s1, %s421_s25 }
  0x10   : > { %v242_v5 = vld [vmem:[%s231_s28] sm:$0xff]  ;;  %v243_v6 = vld [vmem:[%s231_s28 + $0x8] sm:$0xff]  ;;  %s239_s11 = scalar_lea.vmem %s537_s5, %s421_s25 }
  0x11   : > { %v296_v7 = vld [vmem:[%s235_s6] sm:$0xff]  ;;  %v244_v8 = vpack.c.bf16 %v243_v6, %v242_v5 }
  0x12   : > { %v297_v9 = vpack.c.bf16 %v296_v7, %v296_v7 }
  0x13   : > { %433 = vmatpush3.bf16.msra.mxu0 %v244_v8 }
  0x14   : > { %441 = vmatmul.mubr.msk.bf16.vlgmr.msra.gmra.mrb[0].mxu1 %vm299_vm2, %v297_v9 }
  0x16   : > { %435 = vmatmul.mubr.msk.bf16.vlgmr.msra.gmra.mrb[0].mxu0 %vm251_vm3, %v241_v10 }
  0x88   : > { %v249_v12 = vpop.permute.xlu0 %248 }
  0xe7   : > { %v341_v11 = vpop.f32.mrb[0].mxu1 }
  0xe8   : > { %v442_v13 = vpop.f32.mrb[1].mxu1 }
  0xe9   : > { %v344_v14 = vpop.f32.mrb[2].mxu1  ;;  %v289_v15 = vpop.f32.mrb[0].mxu0 }
  0xea   : > { %v443_v16 = vpop.f32.mrb[3].mxu1  ;;  %v290_v17 = vadd.f32 %v289_v15, %v249_v12  ;;  %v436_v18 = vpop.f32.mrb[1].mxu0 }
  0xeb   : > { %v292_v19 = vpop.f32.mrb[2].mxu0 }
  0xec   : > { %v295_v20 = vmax.f32 %v290_v17, 0.0  ;;  %v437_v21 = vpop.f32.mrb[3].mxu0 }
  0xee   : > { %v347_v22 = vmul.f32 %v341_v11, %v295_v20 }
  0xf0   : > { %348 = vst.msk [vmem:[%s239_s11] sm:$0xff] %vm251_vm3, %v347_v22 }
  0xf1 PF: > { %s15_s18 = sadd.s32 1, %s462_s18  }
  0xf2   : > { %p12_p4 = scmp.ge.s32.totalorder %s15_s18, 4  }
  0xf4   :  { %14 = sbr.rel (!%p12_p4) target bundleno = 1 (0x1), region = 73 }

// kernel: detector_forward.12
= control target key start
LH: loop header
LB: loop body
LE: loop exit
PB: predicated region body
PF: predicated region fallthrough
CT: control target
= control target key end

     0   :  { %s573_s18 = smov 0   ;;  %s575_s19 = smov 0   ;;  %s625_s0 = inlined_call_operand.vmem [shape: f32[2,3,64], index: 0, kind: input, shape index: {}]   ;;  %s626_s1 = inlined_call_operand.vmem [shape: bf16[16,3], index: 1, kind: input, shape index: {}]   ;;  %s627_s2 = inlined_call_operand.vmem [shape: f32[16,1], index: 2, kind: input, shape index: {}]   ;;  %s628_s3 = inlined_call_operand.vmem [shape: bf16[8,16], index: 3, kind: input, shape index: {}]   ;;  %s629_s4 = inlined_call_operand.vmem [shape: f32[8,1], index: 4, kind: input, shape index: {}]   ;;  %s630_s5 = inlined_call_operand.vmem [shape: f32[2,8,64], index: 5, kind: output, shape index: {}]  }
   0x1   :  { %s577_s20 = smov 0  }
   0x2 LB: > { %s27_s21 = sadd.s32 1, %s533_s19  ;;  %p460_p0 = scmp.ge.s32.totalorder %s537_s20, 1  ;;  %s537_s20 = sphi %s577_s20, %s15_s20   ;;  %s533_s19 = sphi %s575_s19, %s632_s19   ;;  %s529_s18 = sphi %s573_s18, %s631_s18  }
   0x3   : > { %p29_p1 = scmp.ge.s32.totalorder %s27_s21, 2  ;;  %p205_p2 = scmp.lt.s32.totalorder %s537_s20, 3 }
   0x5   : > { %s634_s21 = smov (%p29_p1, %s27_s21), 0  ;;  %p206_p3 = pnand %p460_p0, %p205_p2 }
   0x6   : > { %p237_p4 = scmp.lt.s32.totalorder (!%p206_p3), %s529_s18, 1  ;;  %vm277_vm0 = vcmask (!%p206_p3), 1040384   ;;  %v539_v0 = vmov (!%p206_p3), 0.0   ;;  %vm540_vm1 = vmmov (!%p206_p3), 0   ;;  %v256_v1 = vld [vmem:[%s627_s2] sm:$0xff] (!%p206_p3)  ;;  %vm278_vm2 = vcmask (!%p206_p3), 1041408  }
   0x7   : > { %209 = sbr.rel (%p206_p3) target bundleno = 465 (0x1d1), region = 40  ;;  %472 = vmatprep.subr.bf16.mxu0 (!%p206_p3), %v539_v0  ;;  %478 = vmatprep.subr.bf16.mxu1 (!%p206_p3), %v539_v0  ;;  %v541_v2 = vmov (!%p206_p3), 65535   ;;  %v542_v4 = vmov (!%p206_p3), 0   ;;  %v257_v5 = vld [vmem:[%s627_s2 + $0x8] sm:$0xff] (!%p206_p3)  ;;  %v514_v10 = vld [vmem:[%s626_s1] sm:$0xff] (!%p206_p3)   ;;  %vm273_vm3 = vcmask (!%p206_p3), 23552  }
   0x8   : > { %474 = vmatprep.mubr.msk.bf16.mxu0 (!%p206_p3), %vm540_vm1, %v539_v0  ;;  %480 = vmatprep.mubr.msk.bf16.mxu1 (!%p206_p3), %vm540_vm1, %v539_v0  ;;  %v279_v3 = vsel (!%p206_p3), %vm277_vm0, 4294967295, %v541_v2  ;;  %v329_v11 = vld [vmem:[%s629_s4] sm:$0xff] (!%p206_p3)  ;;  %vm335_vm4 = vcmask (!%p206_p3), 130048   ;;  %vm380_vm5 = vcmask (!%p206_p3), 523264  }
   0x9   : > { %512 = vset.pattern.permute.xlu0 (!%p206_p3), %v542_v4  ;;  %513 = vset.pattern.permute.xlu1 (!%p206_p3), %v542_v4  ;;  %v280_v7 = vsel (!%p206_p3), %vm278_vm2, %v279_v3, 0  ;;  %v327_v23 = vld [vmem:[%s628_s3] sm:$0xf] (!%p206_p3) }
   0xa   : > { %260 = vperm.xlu0 (!%p206_p3), %512, %v256_v1   ;;  %332 = vperm.xlu1 (!%p206_p3), %513, %v329_v11  }
   0xe   : > { %s636_s18 = smov (!%p237_p4, %s529_s18), 1  ;;  %265 = vperm.xlu0 %512, %v257_v5  }
   0xf   : > { %s461_s24 = sshll.u32 %s636_s18, 2  ;;  %s462_s11 = sshll.u32 %s636_s18, 3 }
  0x10   : > { %s243_s27 = scalar_lea.vmem %s625_s0, %s461_s24  ;;  %s250_s14 = scalar_lea.vmem %s630_s5, %s462_s11 }
  0x11   : > { %v252_v6 = vld [vmem:[%s243_s27] sm:$0x7] }
  0x12   : > { %v253_v8 = vpack.c.bf16 %v252_v6, %v252_v6 }
  0x14   : > { %v282_v9 = vand.u32 %v280_v7, %v253_v8 }
  0x16   : > { %473 = vmatpush3.bf16.msra.mxu0 %v282_v9 }
  0x19   : > { %475 = vmatmul.mubr.msk.bf16.vlgmr.msra.gmra.mrb[0].mxu0 %vm273_vm3, %v514_v10 }
  0x89   : > { %v261_v12 = vpop.permute.xlu0 %260  ;;  %v333_v24 = vpop.permute.xlu1 %332 }
  0x8d   : > { %v266_v16 = vpop.permute.xlu0 %265 }
  0xec   : > { %v318_v13 = vpop.f32.mrb[0].mxu0 }
  0xed   : > { %v319_v14 = vadd.f32 %v318_v13, %v261_v12  ;;  %v476_v15 = vpop.f32.mrb[1].mxu0 }
  0xee   : > { %v321_v17 = vpop.f32.mrb[2].mxu0 }
  0xef   : > { %v322_v18 = vadd.f32 %v321_v17, %v266_v16  ;;  %v477_v19 = vpop.f32.mrb[3].mxu0  ;;  %v325_v20 = vmax.f32 %v319_v14, 0.0 }
  0xf1   : > { %v326_v21 = vmax.f32 %v322_v18, 0.0 }
  0xf3   : > { %v328_v22 = vpack.c.bf16 %v326_v21, %v325_v20 }
  0xf5   : > { %479 = vmatpush3.bf16.msra.mxu1 %v328_v22 }
  0xf8   : > { %481 = vmatmul.mubr.msk.bf16.vlgmr.msra.gmra.mrb[0].mxu1 %vm335_vm4, %v327_v23 }
 0x1cb   : > { %v373_v25 = vpop.f32.mrb[0].mxu1 }
 0x1cc   : > { %v374_v26 = vadd.f32 %v373_v25, %v333_v24  ;;  %v482_v27 = vpop.f32.mrb[1].mxu1 }
 0x1cd   : > { %v376_v28 = vpop.f32.mrb[2].mxu1 }
 0x1ce   : > { %v379_v29 = vmax.f32 %v374_v26, 0.0  ;;  %v483_v30 = vpop.f32.mrb[3].mxu1 }
 0x1d0   : > { %381 = vst.msk [vmem:[%s250_s14] sm:$0xff] %vm380_vm5, %v379_v29 }
 0x1d1 PF: > { %s15_s20 = sadd.s32 1, %s537_s20   ;;  %s631_s18 = smov %s533_s19 }
 0x1d2   : > { %p12_p5 = scmp.ge.s32.totalorder %s15_s20, 4   ;;  %s632_s19 = smov %s634_s21 }
 0x1d4   :  { %14 = sbr.rel (!%p12_p5) target bundleno = 2 (0x2), region = 70 }

// kernel: detector_forward.17
= control target key start
LH: loop header
LB: loop body
LE: loop exit
PB: predicated region body
PF: predicated region fallthrough
CT: control target
= control target key end

     0   :  { %s588_s26 = smov 0   ;;  %s624_s0 = inlined_call_operand.vmem [shape: f32[2,8,64], index: 0, kind: input, shape index: {}]   ;;  %s625_s1 = inlined_call_operand.vmem [shape: f32[2,8,16], index: 1, kind: input, shape index: {}]   ;;  %s626_s2 = inlined_call_operand.vmem [shape: bf16[16,64], index: 2, kind: input, shape index: {}]   ;;  %s627_s3 = inlined_call_operand.vmem [shape: bf16[8,8], index: 3, kind: input, shape index: {}]   ;;  %s628_s4 = inlined_call_operand.vmem [shape: f32[8,1], index: 4, kind: input, shape index: {}]   ;;  %s629_s5 = inlined_call_operand.vmem [shape: f32[8,1], index: 5, kind: input, shape index: {}]   ;;  %s630_s6 = inlined_call_operand.<no memory space> [shape: f32[1,1], index: 6, kind: input, shape index: {}]   ;;  %s631_s7 = inlined_call_operand.vmem [shape: f32[2,1,64], index: 7, kind: output, shape index: {}]  }
   0x1   :  { %v12_v0 = vstv %s630_s6 }
   0x2   :  { %13 = vst [vmem:[#allocation2] sm:$0x1] %v12_v0 }
   0x3 LB: > { %s492_s27 = sadd.s32 4294967295, %s540_s26   ;;  %p496_p0 = scmp.ge.s32.totalorder %s540_s26, 1  ;;  %s540_s26 = sphi %s588_s26, %s19_s26  }
   0x4   : > { %p247_p1 = scmp.lt.s32.totalorder %s540_s26, 3 }
   0x6   : > { %p248_p2 = pnand %p496_p0, %p247_p1 }
   0x7   : > { %p280_p3 = scmp.lt.s32.totalorder (!%p248_p2), %s492_s27, 1  ;;  %v533_v1 = vld [vmem:[%s626_s2] sm:$0xff] (!%p248_p2)   ;;  %v542_v2 = vmov (!%p248_p2), 0.0   ;;  %vm543_vm0 = vmmov (!%p248_p2), 0   ;;  %v544_v4 = vmov (!%p248_p2), 0   ;;  %vm305_vm1 = vcmask (!%p248_p2), 1043456  }
   0x8   : > { %251 = sbr.rel (%p248_p2) target bundleno = 261 (0x105), region = 48  ;;  %508 = vmatprep.subr.bf16.mxu0 (!%p248_p2), %v542_v2  ;;  %514 = vmatprep.subr.bf16.mxu1 (!%p248_p2), %v542_v2  ;;  %v295_v3 = vld [vmem:[%s628_s4] sm:$0xff] (!%p248_p2)  ;;  %vm360_vm2 = vcmask (!%p248_p2), 130048   ;;  %vm301_vm3 = vcmask (!%p248_p2), 64512   ;;  %vm412_vm4 = vcmask (!%p248_p2), 523264   ;;  %v426_v26 = vlaneseq (!%p248_p2) }
   0x9   : > { %515 = vmatpush3.bf16.msra.mxu1 (!%p248_p2), %v533_v1  ;;  %510 = vmatprep.mubr.msk.bf16.mxu0 (!%p248_p2), %vm543_vm0, %v542_v2  ;;  %v420_v5 = vld [vmem:[#allocation2] sm:$0x1] (!%p248_p2)  ;;  %vm431_vm5 = vcmask (!%p248_p2), 516096  }
   0xa   : > { %516 = vmatprep.mubr.msk.bf16.mxu1 (!%p248_p2), %vm543_vm0, %v542_v2  ;;  %531 = vset.pattern.permute.xlu0 (!%p248_p2), %v544_v4  ;;  %v405_v6 = vld [vmem:[%s629_s5] sm:$0xff] (!%p248_p2)  ;;  %v427_v30 = vshrl.u32 (!%p248_p2), %v426_v26, 7 }
   0xb   : > { %298 = vperm.xlu0 (!%p248_p2), %531, %v295_v3   ;;  %532 = vset.pattern.permute.xlu1 (!%p248_p2), %v544_v4  ;;  %v292_v12 = vld [vmem:[%s627_s3] sm:$0xf] (!%p248_p2) }
   0xc   : > { %423 = vperm.xlu1 (!%p248_p2), %532, %v420_v5   ;;  %v428_v33 = vsub.s32 (!%p248_p2), 0, %v427_v30 }
   0xf   : > { %s633_s27 = smov (!%p280_p3, %s492_s27), 1  ;;  %408 = vperm.xlu0 %531, %v405_v6  }
  0x10   : > { %s497_s8 = sshll.u32 %s633_s27, 3  ;;  %s290_s21 = scalar_lea.vmem %s631_s7, %s633_s27 }
  0x11   : > { %s283_s11 = scalar_lea.vmem %s624_s0, %s497_s8  ;;  %s287_s14 = scalar_lea.vmem %s625_s1, %s497_s8 }
  0x12   : > { %v293_v7 = vld [vmem:[%s283_s11] sm:$0xff] }
  0x13   : > { %v350_v8 = vld [vmem:[%s287_s14] sm:$0xff]  ;;  %v294_v9 = vpack.c.bf16 %v293_v7, %v293_v7 }
  0x14   : > { %v351_v10 = vpack.c.bf16 %v350_v8, %v350_v8 }
  0x15   : > { %v307_v11 = vsel %vm305_vm1, %v294_v9, 0 }
  0x16   : > { %517 = vmatmul.mubr.msk.bf16.vlgmr.msra.gmra.mrb[0].mxu1 %vm360_vm2, %v351_v10  ;;  %509 = vmatpush3.bf16.msra.mxu0 %v307_v11 }
  0x19   : > { %511 = vmatmul.mubr.msk.bf16.vlgmr.msra.gmra.mrb[0].mxu0 %vm301_vm3, %v292_v12 }
  0x8a   : > { %v299_v17 = vpop.permute.xlu0 %298 }
  0x8b   : > { %v424_v34 = vpop.permute.xlu1 %423 }
  0x8c   : > { %v429_v37 = vrot.slane %v424_v34, %v428_v33 }
  0x8e   : > { %v409_v25 = vpop.permute.xlu0 %408 }
  0xe9   : > { %v398_v13 = vpop.f32.mrb[0].mxu1 }
  0xea   : > { %v518_v14 = vpop.f32.mrb[1].mxu1 }
  0xeb   : > { %v401_v15 = vpop.f32.mrb[2].mxu1 }
  0xec   : > { %v519_v16 = vpop.f32.mrb[3].mxu1  ;;  %v343_v18 = vpop.f32.mrb[0].mxu0 }
  0xed   : > { %v344_v19 = vadd.f32 %v343_v18, %v299_v17  ;;  %v512_v20 = vpop.f32.mrb[1].mxu0 }
  0xee   : > { %v346_v21 = vpop.f32.mrb[2].mxu0 }
  0xef   : > { %v349_v22 = vmax.f32 %v344_v19, 0.0  ;;  %v513_v23 = vpop.f32.mrb[3].mxu0 }
  0xf1   : > { %v404_v24 = vmul.f32 %v398_v13, %v349_v22 }
  0xf3   : > { %v411_v27 = vmul.f32 %v409_v25, %v404_v24 }
  0xf5   : > { %v413_v28 = vsel %vm412_vm4, %v411_v27, 0.0 }
  0xf6   : > { %v414_v29 = vrot.slane %v413_v28, 4 }
  0xf8   : > { %v415_v31 = vadd.f32 %v414_v29, %v413_v28 }
  0xfa   : > { %v416_v32 = vrot.slane %v415_v31, 2 }
  0xfc   : > { %v417_v35 = vadd.f32 %v416_v32, %v415_v31 }
  0xfe   : > { %v418_v36 = vrot.slane %v417_v35, 1 }
 0x100   : > { %v419_v38 = vadd.f32 %v418_v36, %v417_v35 }
 0x102   : > { %v430_v39 = vadd.f32 %v429_v37, %v419_v38 }
 0x104   : > { %432 = vst.msk [vmem:[%s290_s21] sm:$0x1] %vm431_vm5, %v430_v39 }
 0x105 PF: > { %s19_s26 = sadd.s32 1, %s540_s26  }
 0x106   : > { %p16_p4 = scmp.ge.s32.totalorder %s19_s26, 4  }
 0x108   :  { %18 = sbr.rel (!%p16_p4) target bundleno = 3 (0x3), region = 81 }

// kernel: detector_forward.18
= control target key start
LH: loop header
LB: loop body
LE: loop exit
PB: predicated region body
PF: predicated region fallthrough
CT: control target
= control target key end

     0   :  { %s545_s20 = smov 0   ;;  %s594_s0 = inlined_call_operand.vmem [shape: f32[2,32,4], index: 0, kind: input, shape index: {}]   ;;  %s595_s1 = inlined_call_operand.vmem [shape: f32[2,1,64], index: 1, kind: input, shape index: {}]   ;;  %s596_s2 = inlined_call_operand.vmem [shape: bf16[64,4], index: 2, kind: input, shape index: {}]   ;;  %s597_s3 = inlined_call_operand.vmem [shape: f32[32,1], index: 3, kind: input, shape index: {}]   ;;  %s598_s4 = inlined_call_operand.<no memory space> [shape: f32[1,1], index: 4, kind: input, shape index: {}]   ;;  %s599_s5 = inlined_call_operand.vmem [shape: f32[2,1,4], index: 5, kind: output, shape index: {}]  }
   0x1   :  { %v10_v0 = vstv %s598_s4 }
   0x2   :  { %11 = vst [vmem:[#allocation2] sm:$0x1] %v10_v0 }
   0x3 LB: > { %s447_s21 = sadd.s32 4294967295, %s507_s20   ;;  %p451_p0 = scmp.ge.s32.totalorder %s507_s20, 1  ;;  %s507_s20 = sphi %s545_s20, %s17_s20  }
   0x4   : > { %p197_p1 = scmp.lt.s32.totalorder %s507_s20, 3 }
   0x6   : > { %p198_p2 = pnand %p451_p0, %p197_p1 }
   0x7   : > { %v493_v1 = vld [vmem:[%s596_s2] sm:$0xff] (!%p198_p2)   ;;  %v509_v2 = vmov (!%p198_p2), 0.0   ;;  %v494_v3 = vld [vmem:[%s596_s2 + $0x8] sm:$0xff] (!%p198_p2)   ;;  %vm510_vm0 = vmmov (!%p198_p2), 0   ;;  %p226_p3 = scmp.lt.s32.totalorder (!%p198_p2), %s447_s21, 1  ;;  %v337_v5 = vld [vmem:[%s597_s3 + $0x10] sm:$0xff] (!%p198_p2)  ;;  %v327_v21 = vlaneseq (!%p198_p2) }
   0x8   : > { %201 = sbr.rel (%p198_p2) target bundleno = 294 (0x126), region = 40  ;;  %468 = vmatprep.subr.bf16.mxu0 (!%p198_p2), %v509_v2  ;;  %476 = vmatprep.mubr.msk.bf16.mxu0 (!%p198_p2), %vm510_vm0, %v509_v2  ;;  %v335_v4 = vld [vmem:[%s597_s3] sm:$0xff] (!%p198_p2)  ;;  %v511_v6 = vmov (!%p198_p2), 0   ;;  %v495_v7 = vld [vmem:[%s596_s2 + $0x10] sm:$0xff] (!%p198_p2)   ;;  %v336_v8 = vld [vmem:[%s597_s3 + $0x8] sm:$0xff] (!%p198_p2)  ;;  %vm272_vm1 = vcmask (!%p198_p2), 523264  }
   0x9   : > { %469 = vmatpush3.bf16.msra.mxu0 (!%p198_p2), %v493_v1  ;;  %491 = vset.pattern.permute.xlu0 (!%p198_p2), %v511_v6  ;;  %v338_v9 = vld [vmem:[%s597_s3 + $0x18] sm:$0xff] (!%p198_p2)  ;;  %v377_v12 = vld [vmem:[#allocation2] sm:$0x1] (!%p198_p2)  ;;  %v328_v22 = vshrl.u32 (!%p198_p2), %v327_v21, 7  ;;  %vm363_vm2 = vcmask (!%p198_p2), 31744   ;;  %vm389_vm3 = vcmask (!%p198_p2), 24576  }
   0xa   : > { %470 = vmatprep.subr.bf16.mxu0 (!%p198_p2), %v509_v2  ;;  %492 = vset.pattern.permute.xlu1 (!%p198_p2), %v511_v6  ;;  %v496_v10 = vld [vmem:[%s596_s2 + $0x18] sm:$0xff] (!%p198_p2)  }
   0xb   : > { %341 = vperm.xlu0 (!%p198_p2), %491, %v335_v4   ;;  %351 = vperm.xlu1 (!%p198_p2), %492, %v337_v5   ;;  %v329_v23 = vsub.s32 (!%p198_p2), 0, %v328_v22 }
   0xd   : > { %471 = vmatpush3.bf16.msra.mxu0 (!%p198_p2), %v494_v3 }
   0xe   : > { %472 = vmatprep.subr.bf16.mxu0 (!%p198_p2), %v509_v2 }
   0xf   : > { %s601_s21 = smov (!%p226_p3, %s447_s21), 1  ;;  %346 = vperm.xlu0 %491, %v336_v8   ;;  %356 = vperm.xlu1 %492, %v338_v9  }
  0x10   : > { %s233_s8 = scalar_lea.vmem %s595_s1, %s601_s21  ;;  %s462_s15 = sshll.u32 %s601_s21, 5 }
  0x11   : > { %473 = vmatpush3.bf16.msra.mxu0 %v495_v7  ;;  %v238_v11 = vld [vmem:[%s233_s8] sm:$0x1]  ;;  %s230_s18 = scalar_lea.vmem %s594_s0, %s462_s15  ;;  %s236_s23 = scalar_lea.vmem %s599_s5, %s601_s21 }
  0x12   : > { %474 = vmatprep.subr.bf16.mxu0 %v509_v2  ;;  %v239_v13 = vpack.c.bf16 %v238_v11, %v238_v11  ;;  %v323_v28 = vld [vmem:[%s230_s18] sm:$0xff]  ;;  %v324_v29 = vld [vmem:[%s230_s18 + $0x8] sm:$0xff]  ;;  %v325_v30 = vld [vmem:[%s230_s18 + $0x10] sm:$0xff] }
  0x13   : > { %380 = vperm.xlu0 %491, %v377_v12   ;;  %v326_v31 = vld [vmem:[%s230_s18 + $0x18] sm:$0xff] }
  0x15   : > { %475 = vmatpush3.bf16.msra.mxu0 %v496_v10 }
  0x18   : > { %477 = vmatmul.mubr.msk.bf16.vlgmr.msra.gmra.mrb[0].mxu0 %vm272_vm1, %v239_v13 }
  0x8a   : > { %v342_v25 = vpop.permute.xlu0 %341  ;;  %v352_v26 = vpop.permute.xlu1 %351 }
  0x8e   : > { %v347_v37 = vpop.permute.xlu0 %346  ;;  %v357_v38 = vpop.permute.xlu1 %356 }
  0x92   : > { %v381_v54 = vpop.permute.xlu0 %380 }
  0x93   : > { %v386_v56 = vrot.slane %v381_v54, %v329_v23 }
  0xeb   : > { %v310_v14 = vpop.f32.mrb[0].mxu0 }
  0xec   : > { %v459_v15 = vmul.f32 -1.442695, %v310_v14  ;;  %v478_v16 = vpop.f32.mrb[1].mxu0 }
  0xed   : > { %v313_v17 = vpop.f32.mrb[2].mxu0 }
  0xee   : > { %497 = vpow2.f32 %v459_v15  ;;  %v479_v18 = vpop.f32.mrb[3].mxu0 }
  0xf8   : > { %v498_v19 = vpop.eup %497 }
  0xf9   : > { %v319_v20 = vadd.f32 1.0, %v498_v19 }
  0xfb   : > { %499 = vrcp.f32 %v319_v20 }
 0x105   : > { %v500_v24 = vpop.eup %499 }
 0x106   : > { %v322_v27 = vsub.f32 1.0, %v500_v24 }
 0x108   : > { %v330_v32 = vrot.slane %v322_v27, %v329_v23 }
 0x10a   : > { %v331_v33 = vmul.f32 %v330_v32, %v323_v28  ;;  %v332_v34 = vmul.f32 %v330_v32, %v324_v29  ;;  %v333_v35 = vmul.f32 %v330_v32, %v325_v30  ;;  %v334_v36 = vmul.f32 %v330_v32, %v326_v31 }
 0x10c   : > { %v359_v39 = vmul.f32 %v342_v25, %v331_v33  ;;  %v360_v40 = vmul.f32 %v347_v37, %v332_v34  ;;  %v361_v41 = vmul.f32 %v352_v26, %v333_v35  ;;  %v362_v44 = vmul.f32 %v357_v38, %v334_v36 }
 0x10e   : > { %v364_v42 = vsel %vm363_vm2, %v359_v39, 0.0  ;;  %v365_v43 = vsel %vm363_vm2, %v360_v40, 0.0  ;;  %v367_v46 = vsel %vm363_vm2, %v361_v41, 0.0  ;;  %v369_v48 = vsel %vm363_vm2, %v362_v44, 0.0 }
 0x10f   : > { %v366_v45 = vadd.f32 %v365_v43, %v364_v42 }
 0x111   : > { %v368_v47 = vadd.f32 %v367_v46, %v366_v45 }
 0x113   : > { %v370_v49 = vadd.f32 %v369_v48, %v368_v47 }
 0x115   : > { %v371_v50 = vrot.slane %v370_v49, 4 }
 0x117   : > { %v372_v51 = vadd.f32 %v371_v50, %v370_v49 }
 0x119   : > { %v373_v52 = vrot.slane %v372_v51, 2 }
 0x11b   : > { %v374_v53 = vadd.f32 %v373_v52, %v372_v51 }
 0x11d   : > { %v375_v55 = vrot.slane %v374_v53, 1 }
 0x11f   : > { %v376_v57 = vadd.f32 %v375_v55, %v374_v53 }
 0x121   : > { %v387_v58 = vadd.f32 %v386_v56, %v376_v57 }
 0x123   : > { %v388_v59 = vadd.f32 %v387_v58, %v310_v14 }
 0x125   : > { %390 = vst.msk [vmem:[%s236_s23] sm:$0x1] %vm389_vm3, %v388_v59 }
 0x126 PF: > { %s17_s20 = sadd.s32 1, %s507_s20  }
 0x127   : > { %p14_p4 = scmp.ge.s32.totalorder %s17_s20, 4  }
 0x129   :  { %16 = sbr.rel (!%p14_p4) target bundleno = 3 (0x3), region = 73 }

// kernel: detector_forward.19
= control target key start
LH: loop header
LB: loop body
LE: loop exit
PB: predicated region body
PF: predicated region fallthrough
CT: control target
= control target key end

     0   :  { %s479_s20 = smov 0   ;;  %s513_s0 = inlined_call_operand.vmem [shape: f32[2,16,16], index: 0, kind: input, shape index: {}]   ;;  %s514_s1 = inlined_call_operand.vmem [shape: f32[2,1,4], index: 1, kind: input, shape index: {}]   ;;  %s515_s2 = inlined_call_operand.vmem [shape: bf16[4,16], index: 2, kind: input, shape index: {}]   ;;  %s516_s3 = inlined_call_operand.vmem [shape: f32[16,1], index: 3, kind: input, shape index: {}]   ;;  %s517_s4 = inlined_call_operand.<no memory space> [shape: f32[1,1], index: 4, kind: input, shape index: {}]   ;;  %s518_s5 = inlined_call_operand.vmem [shape: f32[2,1,16], index: 5, kind: output, shape index: {}]  }
   0x1   :  { %v10_v0 = vstv %s517_s4 }
   0x2   :  { %11 = vst [vmem:[#allocation2] sm:$0x1] %v10_v0 }
   0x3 LB: > { %s398_s21 = sadd.s32 4294967295, %s441_s20   ;;  %p402_p0 = scmp.ge.s32.totalorder %s441_s20, 1  ;;  %s441_s20 = sphi %s479_s20, %s17_s20  }
   0x4   : > { %p197_p1 = scmp.lt.s32.totalorder %s441_s20, 3 }
   0x6   : > { %p198_p2 = pnand %p402_p0, %p197_p1 }
   0x7   : > { %v240_v1 = vld [vmem:[%s515_s2] sm:$0x3] (!%p198_p2)  ;;  %vm245_vm0 = vcmask (!%p198_p2), 1041408   ;;  %p226_p3 = scmp.lt.s32.totalorder (!%p198_p2), %s398_s21, 1  ;;  %v443_v2 = vmov (!%p198_p2), 0.0   ;;  %vm444_vm1 = vmmov (!%p198_p2), 0   ;;  %v298_v17 = vlaneseq (!%p198_p2) }
   0x8   : > { %201 = sbr.rel (%p198_p2) target bundleno = 286 (0x11e), region = 40  ;;  %412 = vmatprep.subr.bf16.mxu0 (!%p198_p2), %v443_v2  ;;  %v247_v3 = vsel (!%p198_p2), %vm245_vm0, %v240_v1, 0  ;;  %414 = vmatprep.mubr.msk.bf16.mxu0 (!%p198_p2), %vm444_vm1, %v443_v2  ;;  %v304_v4 = vld [vmem:[%s516_s3] sm:$0xff] (!%p198_p2)  ;;  %v445_v5 = vmov (!%p198_p2), 0   ;;  %v305_v7 = vld [vmem:[%s516_s3 + $0x8] sm:$0xff] (!%p198_p2)  ;;  %vm241_vm2 = vcmask (!%p198_p2), 31744  }
   0x9   : > { %413 = vmatpush3.bf16.msra.mxu0 (!%p198_p2), %v247_v3  ;;  %429 = vset.pattern.permute.xlu0 (!%p198_p2), %v445_v5  ;;  %v328_v6 = vld [vmem:[#allocation2] sm:$0x1] (!%p198_p2)  ;;  %v299_v18 = vshrl.u32 (!%p198_p2), %v298_v17, 7  ;;  %vm318_vm3 = vcmask (!%p198_p2), 130048   ;;  %vm340_vm4 = vcmask (!%p198_p2), 122880  }
   0xa   : > { %308 = vperm.xlu0 (!%p198_p2), %429, %v304_v4   ;;  %430 = vset.pattern.permute.xlu1 (!%p198_p2), %v445_v5 }
   0xb   : > { %331 = vperm.xlu1 (!%p198_p2), %430, %v328_v6   ;;  %v300_v19 = vsub.s32 (!%p198_p2), 0, %v299_v18 }
   0xe   : > { %313 = vperm.xlu0 (!%p198_p2), %429, %v305_v7  }
   0xf   : > { %s520_s21 = smov (!%p226_p3, %s398_s21), 1 }
  0x10   : > { %s233_s27 = scalar_lea.vmem %s514_s1, %s520_s21  ;;  %s409_s30 = sshll.u32 %s520_s21, 4 }
  0x11   : > { %v238_v8 = vld [vmem:[%s233_s27] sm:$0x1]  ;;  %s230_s8 = scalar_lea.vmem %s513_s0, %s409_s30  ;;  %s236_s11 = scalar_lea.vmem %s518_s5, %s520_s21 }
  0x12   : > { %v239_v9 = vpack.c.bf16 %v238_v8, %v238_v8  ;;  %v296_v23 = vld [vmem:[%s230_s8] sm:$0xff]  ;;  %v297_v24 = vld [vmem:[%s230_s8 + $0x8] sm:$0xff] }
  0x14   : > { %415 = vmatmul.mubr.msk.bf16.vlgmr.msra.gmra.mrb[0].mxu0 %vm241_vm2, %v239_v9 }
  0x89   : > { %v309_v21 = vpop.permute.xlu0 %308 }
  0x8a   : > { %v332_v37 = vpop.permute.xlu1 %331 }
  0x8b   : > { %v337_v40 = vrot.slane %v332_v37, %v300_v19 }
  0x8d   : > { %v314_v28 = vpop.permute.xlu0 %313 }
  0xe7   : > { %v283_v10 = vpop.f32.mrb[0].mxu0 }
  0xe8   : > { %v406_v11 = vmul.f32 -1.442695, %v283_v10  ;;  %v416_v12 = vpop.f32.mrb[1].mxu0 }
  0xe9   : > { %v286_v13 = vpop.f32.mrb[2].mxu0 }
  0xea   : > { %431 = vpow2.f32 %v406_v11  ;;  %v417_v14 = vpop.f32.mrb[3].mxu0 }
  0xf4   : > { %v432_v15 = vpop.eup %431 }
  0xf5   : > { %v292_v16 = vadd.f32 1.0, %v432_v15 }
  0xf7   : > { %433 = vrcp.f32 %v292_v16 }
 0x101   : > { %v434_v20 = vpop.eup %433 }
 0x102   : > { %v295_v22 = vsub.f32 1.0, %v434_v20 }
 0x104   : > { %v301_v25 = vrot.slane %v295_v22, %v300_v19 }
 0x106   : > { %v302_v26 = vmul.f32 %v301_v25, %v296_v23  ;;  %v303_v27 = vmul.f32 %v301_v25, %v297_v24 }
 0x108   : > { %v316_v29 = vmul.f32 %v309_v21, %v302_v26  ;;  %v317_v30 = vmul.f32 %v314_v28, %v303_v27 }
 0x10a   : > { %v319_v31 = vsel %vm318_vm3, %v316_v29, 0.0  ;;  %v320_v32 = vsel %vm318_vm3, %v317_v30, 0.0 }
 0x10b   : > { %v321_v33 = vadd.f32 %v320_v32, %v319_v31 }
 0x10d   : > { %v322_v34 = vrot.slane %v321_v33, 4 }
 0x10f   : > { %v323_v35 = vadd.f32 %v322_v34, %v321_v33 }
 0x111   : > { %v324_v36 = vrot.slane %v323_v35, 2 }
 0x113   : > { %v325_v38 = vadd.f32 %v324_v36, %v323_v35 }
 0x115   : > { %v326_v39 = vrot.slane %v325_v38, 1 }
 0x117   : > { %v327_v41 = vadd.f32 %v326_v39, %v325_v38 }
 0x119   : > { %v338_v42 = vadd.f32 %v337_v40, %v327_v41 }
 0x11b   : > { %v339_v43 = vadd.f32 %v338_v42, %v283_v10 }
 0x11d   : > { %341 = vst.msk [vmem:[%s236_s11] sm:$0x1] %vm340_vm4, %v339_v43 }
 0x11e PF: > { %s17_s20 = sadd.s32 1, %s441_s20  }
 0x11f   : > { %p14_p4 = scmp.ge.s32.totalorder %s17_s20, 4  }
 0x121   :  { %16 = sbr.rel (!%p14_p4) target bundleno = 3 (0x3), region = 73 }

// kernel: detector_forward.20
= control target key start
LH: loop header
LB: loop body
LE: loop exit
PB: predicated region body
PF: predicated region fallthrough
CT: control target
= control target key end

     0   :  { %s467_s20 = smov 0   ;;  %s498_s0 = inlined_call_operand.vmem [shape: f32[2,8,64], index: 0, kind: input, shape index: {}]   ;;  %s499_s1 = inlined_call_operand.vmem [shape: f32[2,1,16], index: 1, kind: input, shape index: {}]   ;;  %s500_s2 = inlined_call_operand.vmem [shape: bf16[16,64], index: 2, kind: input, shape index: {}]   ;;  %s501_s3 = inlined_call_operand.vmem [shape: f32[8,1], index: 3, kind: input, shape index: {}]   ;;  %s502_s4 = inlined_call_operand.<no memory space> [shape: f32[1,1], index: 4, kind: input, shape index: {}]   ;;  %s503_s5 = inlined_call_operand.vmem [shape: f32[2,1,64], index: 5, kind: output, shape index: {}]  }
   0x1   :  { %v10_v0 = vstv %s502_s4 }
   0x2   :  { %11 = vst [vmem:[#allocation2] sm:$0x1] %v10_v0 }
   0x3 LB: > { %s387_s21 = sadd.s32 4294967295, %s429_s20   ;;  %p391_p0 = scmp.ge.s32.totalorder %s429_s20, 1  ;;  %s429_s20 = sphi %s467_s20, %s17_s20  }
   0x4   : > { %p196_p1 = scmp.lt.s32.totalorder %s429_s20, 3 }
   0x6   : > { %p197_p2 = pnand %p391_p0, %p196_p1 }
   0x7   : > { %v418_v1 = vld [vmem:[%s500_s2] sm:$0xff] (!%p197_p2)   ;;  %v431_v2 = vmov (!%p197_p2), 0.0   ;;  %p224_p3 = scmp.lt.s32.totalorder (!%p197_p2), %s387_s21, 1  ;;  %vm432_vm0 = vmmov (!%p197_p2), 0   ;;  %v433_v4 = vmov (!%p197_p2), 0   ;;  %vm245_vm1 = vcmask (!%p197_p2), 130048  }
   0x8   : > { %200 = sbr.rel (%p197_p2) target bundleno = 284 (0x11c), region = 40  ;;  %400 = vmatprep.subr.bf16.mxu0 (!%p197_p2), %v431_v2  ;;  %v302_v3 = vld [vmem:[%s501_s3] sm:$0xff] (!%p197_p2)  ;;  %402 = vmatprep.mubr.msk.bf16.mxu0 (!%p197_p2), %vm432_vm0, %v431_v2  ;;  %v297_v15 = vlaneseq (!%p197_p2)  ;;  %vm309_vm2 = vcmask (!%p197_p2), 523264   ;;  %vm329_vm3 = vcmask (!%p197_p2), 516096  }
   0x9   : > { %401 = vmatpush3.bf16.msra.mxu0 (!%p197_p2), %v418_v1  ;;  %417 = vset.pattern.permute.xlu0 (!%p197_p2), %v433_v4  ;;  %v317_v5 = vld [vmem:[#allocation2] sm:$0x1] (!%p197_p2) }
   0xa   : > { %305 = vperm.xlu0 (!%p197_p2), %417, %v302_v3   ;;  %v298_v16 = vshrl.u32 (!%p197_p2), %v297_v15, 7 }
   0xc   : > { %v299_v17 = vsub.s32 (!%p197_p2), 0, %v298_v16 }
   0xe   : > { %320 = vperm.xlu0 (!%p197_p2), %417, %v317_v5  }
   0xf   : > { %s505_s21 = smov (!%p224_p3, %s387_s21), 1 }
  0x10   : > { %s230_s27 = scalar_lea.vmem %s499_s1, %s505_s21  ;;  %s392_s28 = sshll.u32 %s505_s21, 3 }
  0x11   : > { %v235_v6 = vld [vmem:[%s230_s27] sm:$0x1]  ;;  %s227_s6 = scalar_lea.vmem %s498_s0, %s392_s28  ;;  %s233_s9 = scalar_lea.vmem %s503_s5, %s505_s21 }
  0x12   : > { %v236_v7 = vpack.c.bf16 %v235_v6, %v235_v6  ;;  %v296_v20 = vld [vmem:[%s227_s6] sm:$0xff] }
  0x14   : > { %403 = vmatmul.mubr.msk.bf16.vlgmr.msra.gmra.mrb[0].mxu0 %vm245_vm1, %v236_v7 }
  0x89   : > { %v306_v23 = vpop.permute.xlu0 %305 }
  0x8d   : > { %v321_v30 = vpop.permute.xlu0 %320 }
  0x8e   : > { %v326_v33 = vrot.slane %v321_v30, %v299_v17 }
  0xe7   : > { %v283_v8 = vpop.f32.mrb[0].mxu0 }
  0xe8   : > { %v395_v9 = vmul.f32 -1.442695, %v283_v8  ;;  %v404_v10 = vpop.f32.mrb[1].mxu0 }
  0xe9   : > { %v286_v11 = vpop.f32.mrb[2].mxu0 }
  0xea   : > { %419 = vpow2.f32 %v395_v9  ;;  %v405_v12 = vpop.f32.mrb[3].mxu0 }
  0xf4   : > { %v420_v13 = vpop.eup %419 }
  0xf5   : > { %v292_v14 = vadd.f32 1.0, %v420_v13 }
  0xf7   : > { %421 = vrcp.f32 %v292_v14 }
 0x101   : > { %v422_v18 = vpop.eup %421 }
 0x102   : > { %v295_v19 = vsub.f32 1.0, %v422_v18 }
 0x104   : > { %v300_v21 = vrot.slane %v295_v19, %v299_v17 }
 0x106   : > { %v301_v22 = vmul.f32 %v300_v21, %v296_v20 }
 0x108   : > { %v308_v24 = vmul.f32 %v306_v23, %v301_v22 }
 0x10a   : > { %v310_v25 = vsel %vm309_vm2, %v308_v24, 0.0 }
 0x10b   : > { %v311_v26 = vrot.slane %v310_v25, 4 }
 0x10d   : > { %v312_v27 = vadd.f32 %v311_v26, %v310_v25 }
 0x10f   : > { %v313_v28 = vrot.slane %v312_v27, 2 }
 0x111   : > { %v314_v29 = vadd.f32 %v313_v28, %v312_v27 }
 0x113   : > { %v315_v31 = vrot.slane %v314_v29, 1 }
 0x115   : > { %v316_v32 = vadd.f32 %v315_v31, %v314_v29 }
 0x117   : > { %v327_v34 = vadd.f32 %v326_v33, %v316_v32 }
 0x119   : > { %v328_v35 = vadd.f32 %v327_v34, %v283_v8 }
 0x11b   : > { %330 = vst.msk [vmem:[%s233_s9] sm:$0x1] %vm329_vm3, %v328_v35 }
 0x11c PF: > { %s17_s20 = sadd.s32 1, %s429_s20  }
 0x11d   : > { %p14_p4 = scmp.ge.s32.totalorder %s17_s20, 4  }
 0x11f   :  { %16 = sbr.rel (!%p14_p4) target bundleno = 3 (0x3), region = 73 }

// kernel: detector_forward.21
= control target key start
LH: loop header
LB: loop body
LE: loop exit
PB: predicated region body
PF: predicated region fallthrough
CT: control target
= control target key end

     0   :  { %s592_s20 = smov 0   ;;  %s644_s0 = inlined_call_operand.vmem [shape: f32[2,4,256], index: 0, kind: input, shape index: {}]   ;;  %s645_s1 = inlined_call_operand.vmem [shape: f32[2,1,64], index: 1, kind: input, shape index: {}]   ;;  %s646_s2 = inlined_call_operand.vmem [shape: bf16[64,256], index: 2, kind: input, shape index: {}]   ;;  %s647_s3 = inlined_call_operand.vmem [shape: f32[4,1], index: 3, kind: input, shape index: {}]   ;;  %s648_s4 = inlined_call_operand.<no memory space> [shape: f32[1,1], index: 4, kind: input, shape index: {}]   ;;  %s649_s5 = inlined_call_operand.vmem [shape: f32[2,1,256], index: 5, kind: output, shape index: {}]  }
   0x1   :  { %v10_v0 = vstv %s648_s4 }
   0x2   :  { %11 = vst [vmem:[#allocation2] sm:$0x1] %v10_v0 }
   0x3 LB: > { %s494_s21 = sadd.s32 4294967295, %s554_s20   ;;  %p498_p0 = scmp.ge.s32.totalorder %s554_s20, 1  ;;  %s554_s20 = sphi %s592_s20, %s17_s20  }
   0x4   : > { %p197_p1 = scmp.lt.s32.totalorder %s554_s20, 3 }
   0x6   : > { %p198_p2 = pnand %p498_p0, %p197_p1 }
   0x7   : > { %v528_v1 = vld [vmem:[%s646_s2 + $0x4] ss:$8 sps:$4 sm:$0xff] (!%p198_p2)   ;;  %p227_p3 = scmp.lt.s32.totalorder (!%p198_p2), %s494_s21, 1  ;;  %v530_v2 = vld [vmem:[%s646_s2] ss:$8 sps:$4 sm:$0xff] (!%p198_p2)   ;;  %v556_v3 = vmov (!%p198_p2), 0   ;;  %v350_v24 = vlaneseq (!%p198_p2) }
   0x8   : > { %201 = sbr.rel (%p198_p2) target bundleno = 300 (0x12c), region = 40  ;;  %326 = vmatprep.mubr.bf16.mxu0 (!%p198_p2), %v556_v3  ;;  %527 = vset.pattern.permute.xlu0 (!%p198_p2), %v556_v3  ;;  %v531_v4 = vld [vmem:[%s646_s2 + $0x14] ss:$8 sps:$4 sm:$0xff] (!%p198_p2)   ;;  %v533_v5 = vld [vmem:[%s646_s2 + $0x10] ss:$8 sps:$4 sm:$0xff] (!%p198_p2)   ;;  %vm290_vm0 = vcmask (!%p198_p2), 523264  }
   0x9   : > { %294 = vmatprep.subr.bf16.mxu0 (!%p198_p2), %v528_v1  ;;  %v534_v6 = vld [vmem:[%s646_s2 + $0x24] ss:$8 sps:$4 sm:$0xff] (!%p198_p2)   ;;  %v363_v7 = vld [vmem:[%s647_s3] sm:$0xf] (!%p198_p2)  ;;  %v537_v10 = vld [vmem:[%s646_s2 + $0x34] ss:$8 sps:$4 sm:$0xff] (!%p198_p2)  }
   0xa   : > { %295 = vmatpush1.bf16.msra.mxu0 (!%p198_p2), %v530_v2  ;;  %366 = vperm.xlu0 (!%p198_p2), %527, %v363_v7   ;;  %v536_v8 = vld [vmem:[%s646_s2 + $0x20] ss:$8 sps:$4 sm:$0xff] (!%p198_p2)   ;;  %v539_v11 = vld [vmem:[%s646_s2 + $0x30] ss:$8 sps:$4 sm:$0xff] (!%p198_p2)   ;;  %v557_v25 = vmov (!%p198_p2), 839922192  }
   0xb   : > { %296 = vmatprep.subr.bf16.mxu0 (!%p198_p2), %v531_v4  ;;  %v395_v9 = vld [vmem:[#allocation2] sm:$0x1] (!%p198_p2)  ;;  %v369_v26 = vunpack.c.l.s4 (!%p198_p2), %v557_v25  ;;  %v351_v27 = vshrl.u32 (!%p198_p2), %v350_v24, 7  ;;  %vm380_vm1 = vcmask (!%p198_p2), 1043456   ;;  %v558_v54 = vmov (!%p198_p2), 1966171168  }
   0xc   : > { %v413_v55 = vunpack.c.l.s4 (!%p198_p2), %v558_v54  ;;  %vm429_vm2 = vcmp.lt.s32.totalorder (!%p198_p2), %v350_v24, 256 }
   0xd   : > { %v370_v28 = vunpack.c.0.s8 (!%p198_p2), %v369_v26  ;;  %v352_v29 = vsub.s32 (!%p198_p2), 0, %v351_v27 }
   0xe   : > { %297 = vmatpush1.bf16.msra.mxu0 (!%p198_p2), %v533_v5  ;;  %398 = vperm.xlu0 (!%p198_p2), %527, %v395_v9   ;;  %v414_v61 = vunpack.c.0.s8 (!%p198_p2), %v413_v55 }
   0xf   : > { %s651_s21 = smov (!%p227_p3, %s494_s21), 1  ;;  %298 = vmatprep.subr.bf16.mxu0 %v534_v6  ;;  %v373_v34 = vsub.s32 %v370_v28, %v351_v27 }
  0x10   : > { %s234_s14 = scalar_lea.vmem %s645_s1, %s651_s21  ;;  %s515_s17 = sshll.u32 %s651_s21, 3  ;;  %v417_v2 = vsub.s32 %v414_v61, %v351_v27 }
  0x11   : > { %v240_v12 = vld [vmem:[%s234_s14] sm:$0x1]  ;;  %s231_s22 = scalar_lea.vmem %s644_s0, %s515_s17  ;;  %s501_s23 = sshll.u32 %s651_s21, 1 }
  0x12   : > { %299 = vmatpush1.bf16.msra.mxu0 %v536_v8  ;;  %v241_v13 = vpack.c.bf16 %v240_v12, %v240_v12  ;;  %v349_v38 = vld [vmem:[%s231_s22] sm:$0xff]  ;;  %s238_s25 = scalar_lea.vmem %s649_s5, %s501_s23 }
  0x13   : > { %300 = vmatprep.subr.bf16.mxu0 %v537_v10 }
  0x16   : > { %301 = vmatpush1.bf16.msra.mxu0 %v539_v11 }
  0x19   : > { %510 = vmatmul.mubr.msk.bf16.vlgmr.msra.gmra.mrb[0].mxu0 %vm290_vm0, %v241_v13 }
  0x89   : > { %v367_v37 = vpop.permute.xlu0 %366 }
  0x8a   : > { %v374_v40 = vrot.slane %v367_v37, %v373_v34 }
  0x8d   : > { %v399_v53 = vpop.permute.xlu0 %398 }
  0x8e   : > { %v404_v60 = vrot.slane %v399_v53, %v352_v29 }
  0xec   : > { %v328_v14 = vpop.f32.mrb[0].mxu0 }
  0xed   : > { %v511_v15 = vmul.f32 -1.442695, %v328_v14  ;;  %v330_v16 = vpop.f32.mrb[1].mxu0 }
  0xee   : > { %v512_v17 = vmul.f32 -1.442695, %v330_v16  ;;  %v332_v18 = vpop.f32.mrb[2].mxu0 }
  0xef   : > { %540 = vpow2.f32 %v511_v15  ;;  %v333_v19 = vpop.f32.mrb[3].mxu0 }
  0xf0   : > { %542 = vpow2.f32 %v512_v17 }
  0xf9   : > { %v541_v20 = vpop.eup %540 }
  0xfa   : > { %v543_v21 = vpop.eup %542  ;;  %v341_v22 = vadd.f32 1.0, %v541_v20 }
  0xfb   : > { %v342_v23 = vadd.f32 1.0, %v543_v21 }
  0xfc   : > { %544 = vrcp.f32 %v341_v22 }
  0xfd   : > { %546 = vrcp.f32 %v342_v23 }
 0x106   : > { %v545_v30 = vpop.eup %544 }
 0x107   : > { %v547_v31 = vpop.eup %546  ;;  %v347_v32 = vsub.f32 1.0, %v545_v30 }
 0x108   : > { %v348_v33 = vsub.f32 1.0, %v547_v31 }
 0x109   : > { %v353_v35 = vrot.slane %v347_v32, %v352_v29 }
 0x10a   : > { %v357_v36 = vrot.slane %v348_v33, %v352_v29 }
 0x10c   : > { %v360_v39 = vcombine.low %v353_v35, %v357_v36 }
 0x10e   : > { %v362_v41 = vmul.f32 %v360_v39, %v349_v38 }
 0x110   : > { %v376_v42 = vmul.f32 %v374_v40, %v362_v41 }
 0x112   : > { %v378_v43 = vcombine.high %v376_v42, %v376_v42  ;;  %v381_v44 = vsel %vm380_vm1, %v376_v42, 0.0 }
 0x113   : > { %v382_v45 = vrot.slane %v381_v44, 4 }
 0x114   : > { %v388_v46 = vsel %vm380_vm1, %v378_v43, 0.0 }
 0x115   : > { %v383_v47 = vadd.f32 %v382_v45, %v381_v44  ;;  %v389_v48 = vrot.slane %v388_v46, 4 }
 0x117   : > { %v384_v49 = vrot.slane %v383_v47, 2  ;;  %v390_v50 = vadd.f32 %v389_v48, %v388_v46 }
 0x119   : > { %v385_v51 = vadd.f32 %v384_v49, %v383_v47  ;;  %v391_v52 = vrot.slane %v390_v50, 2 }
 0x11b   : > { %v386_v56 = vrot.slane %v385_v51, 1  ;;  %v392_v57 = vadd.f32 %v391_v52, %v390_v50 }
 0x11d   : > { %v387_v58 = vadd.f32 %v386_v56, %v385_v51  ;;  %v393_v59 = vrot.slane %v392_v57, 1 }
 0x11f   : > { %v394_v62 = vadd.f32 %v393_v59, %v392_v57  ;;  %v405_v63 = vadd.f32 %v404_v60, %v387_v58 }
 0x121   : > { %v406_v0 = vadd.f32 %v404_v60, %v394_v62  ;;  %v407_v1 = vadd.f32 %v405_v63, %v328_v14 }
 0x123   : > { %v408_v3 = vadd.f32 %v406_v0, %v330_v16 }
 0x125   : > { %v411_v4 = vcombine.low %v407_v1, %v408_v3 }
 0x127   : > { %v418_v5 = vrot.slane %v411_v4, %v417_v2 }
 0x129   : > { %v425_v6 = vrot.slane %v418_v5, %v417_v2 }
 0x12b   : > { %431 = vst.msk [vmem:[%s238_s25] sm:$0x3] %vm429_vm2, %v425_v6 }
 0x12c PF: > { %s17_s20 = sadd.s32 1, %s554_s20  }
 0x12d   : > { %p14_p4 = scmp.ge.s32.totalorder %s17_s20, 4  }
 0x12f   :  { %16 = sbr.rel (!%p14_p4) target bundleno = 3 (0x3), region = 73 }

// kernel: detector_forward.11
= control target key start
LH: loop header
LB: loop body
LE: loop exit
PB: predicated region body
PF: predicated region fallthrough
CT: control target
= control target key end

     0   :  { %s590_s18 = smov 0   ;;  %s592_s19 = smov 0   ;;  %s642_s0 = inlined_call_operand.vmem [shape: f32[2,3,256], index: 0, kind: input, shape index: {}]   ;;  %s643_s1 = inlined_call_operand.vmem [shape: bf16[8,3], index: 1, kind: input, shape index: {}]   ;;  %s644_s2 = inlined_call_operand.vmem [shape: f32[8,1], index: 2, kind: input, shape index: {}]   ;;  %s645_s3 = inlined_call_operand.vmem [shape: bf16[4,8], index: 3, kind: input, shape index: {}]   ;;  %s646_s4 = inlined_call_operand.vmem [shape: f32[4,1], index: 4, kind: input, shape index: {}]   ;;  %s647_s5 = inlined_call_operand.vmem [shape: f32[2,4,256], index: 5, kind: output, shape index: {}]  }
   0x1   :  { %s594_s20 = smov 0  }
   0x2 LB: > { %s27_s21 = sadd.s32 1, %s552_s19  ;;  %p494_p0 = scmp.ge.s32.totalorder %s556_s20, 1  ;;  %s556_s20 = sphi %s594_s20, %s15_s20   ;;  %s552_s19 = sphi %s592_s19, %s649_s19   ;;  %s548_s18 = sphi %s590_s18, %s648_s18  }
   0x3   : > { %p29_p1 = scmp.ge.s32.totalorder %s27_s21, 2  ;;  %p208_p2 = scmp.lt.s32.totalorder %s556_s20, 3 }
   0x5   : > { %s651_s21 = smov (%p29_p1, %s27_s21), 0  ;;  %p209_p3 = pnand %p494_p0, %p208_p2 }
   0x6   : > { %p245_p4 = scmp.lt.s32.totalorder (!%p209_p3), %s548_s18, 1  ;;  %v272_v0 = vld [vmem:[%s644_s2] sm:$0xff] (!%p209_p3)  ;;  %vm282_vm0 = vcmask (!%p209_p3), 1040384   ;;  %v558_v1 = vmov (!%p209_p3), 0   ;;  %vm283_vm1 = vcmask (!%p209_p3), 1041408   ;;  %v559_v3 = vmov (!%p209_p3), 65535  }
   0x7   : > { %212 = sbr.rel (%p209_p3) target bundleno = 471 (0x1d7), region = 40  ;;  %324 = vmatprep.mubr.bf16.mxu0 (!%p209_p3), %v558_v1  ;;  %532 = vset.pattern.permute.xlu0 (!%p209_p3), %v558_v1  ;;  %v338_v2 = vld [vmem:[%s646_s4] sm:$0xf] (!%p209_p3)  ;;  %v284_v4 = vsel (!%p209_p3), %vm282_vm0, 4294967295, %v559_v3  ;;  %vm278_vm2 = vcmask (!%p209_p3), 23552   ;;  %vm348_vm3 = vcmask (!%p209_p3), 1043456  }
   0x8   : > { %275 = vperm.xlu0 (!%p209_p3), %532, %v272_v0   ;;  %387 = vmatprep.mubr.bf16.mxu1 (!%p209_p3), %v558_v1  ;;  %v285_v7 = vsel (!%p209_p3), %vm283_vm1, %v284_v4, 0  ;;  %v271_v12 = vld [vmem:[%s643_s1] sm:$0xf] (!%p209_p3)  ;;  %vm344_vm4 = vcmask (!%p209_p3), 64512  }
   0x9   : > { %v335_v25 = vld [vmem:[%s645_s3] sm:$0x3] (!%p209_p3) }
   0xc   : > { %341 = vperm.xlu0 (!%p209_p3), %532, %v338_v2  }
   0xe   : > { %s653_s18 = smov (!%p245_p4, %s548_s18), 1 }
   0xf   : > { %s504_s26 = sshll.u32 %s653_s18, 3 }
  0x10   : > { %s252_s29 = scalar_lea.vmem %s642_s0, %s504_s26  ;;  %s262_s11 = scalar_lea.vmem %s647_s5, %s504_s26 }
  0x11   : > { %v265_v5 = vld [vmem:[%s252_s29] sm:$0x77] }
  0x12   : > { %v267_v6 = vcombine.high %v265_v5, %v265_v5  ;;  %v269_v8 = vpack.c.bf16 %v265_v5, %v265_v5 }
  0x14   : > { %v270_v9 = vpack.c.bf16 %v267_v6, %v267_v6  ;;  %v287_v10 = vand.u32 %v285_v7, %v269_v8 }
  0x16   : > { %v290_v11 = vand.u32 %v285_v7, %v270_v9 }
  0x18   : > { %292 = vmatprep.subr.bf16.mxu0 %v290_v11 }
  0x19   : > { %293 = vmatpush1.bf16.msra.mxu0 %v287_v10 }
  0x1c   : > { %499 = vmatmul.mubr.msk.bf16.vlgmr.msra.gmra.mrb[0].mxu0 %vm278_vm2, %v271_v12 }
  0x87   : > { %v276_v13 = vpop.permute.xlu0 %275 }
  0x8b   : > { %v342_v26 = vpop.permute.xlu0 %341 }
  0xef   : > { %v326_v14 = vpop.f32.mrb[0].mxu0 }
  0xf0   : > { %v327_v15 = vadd.f32 %v326_v14, %v276_v13  ;;  %v328_v16 = vpop.f32.mrb[1].mxu0 }
  0xf1   : > { %v329_v17 = vadd.f32 %v328_v16, %v276_v13  ;;  %v330_v18 = vpop.f32.mrb[2].mxu0 }
  0xf2   : > { %v333_v19 = vmax.f32 %v327_v15, 0.0  ;;  %v331_v20 = vpop.f32.mrb[3].mxu0 }
  0xf3   : > { %v334_v21 = vmax.f32 %v329_v17, 0.0 }
  0xf4   : > { %v336_v22 = vpack.c.bf16 %v333_v19, %v333_v19 }
  0xf5   : > { %v337_v23 = vpack.c.bf16 %v334_v21, %v334_v21 }
  0xf6   : > { %v350_v24 = vsel %vm348_vm3, %v336_v22, 0 }
  0xf7   : > { %500 = vmatprep.subr.msk.bf16.mxu1 %vm348_vm3, %v337_v23 }
  0xf8   : > { %356 = vmatpush1.bf16.msra.mxu1 %v350_v24 }
  0xfb   : > { %501 = vmatmul.mubr.msk.bf16.vlgmr.msra.gmra.mrb[0].mxu1 %vm344_vm4, %v335_v25 }
 0x1ce   : > { %v389_v27 = vpop.f32.mrb[0].mxu1 }
 0x1cf   : > { %v390_v28 = vadd.f32 %v389_v27, %v342_v26  ;;  %v391_v29 = vpop.f32.mrb[1].mxu1 }
 0x1d0   : > { %v392_v30 = vadd.f32 %v391_v29, %v342_v26  ;;  %v393_v31 = vpop.f32.mrb[2].mxu1 }
 0x1d1   : > { %v396_v32 = vmax.f32 %v390_v28, 0.0  ;;  %v394_v33 = vpop.f32.mrb[3].mxu1 }
 0x1d2   : > { %v397_v34 = vmax.f32 %v392_v30, 0.0 }
 0x1d4   : > { %v400_v35 = vcombine.low %v396_v32, %v397_v34 }
 0x1d6   : > { %402 = vst [vmem:[%s262_s11] sm:$0xff] %v400_v35 }
 0x1d7 PF: > { %s15_s20 = sadd.s32 1, %s556_s20   ;;  %s648_s18 = smov %s552_s19 }
 0x1d8   : > { %p12_p5 = scmp.ge.s32.totalorder %s15_s20, 4   ;;  %s649_s19 = smov %s651_s21 }
 0x1da   :  { %14 = sbr.rel (!%p12_p5) target bundleno = 2 (0x2), region = 70 }

</bundles_post_ra>
